<compile_context>
chip_gen: v5e
topology: v5e:2x2
jax: 0.10.0
libtpu: 0.0.40
codegen_flags: <defaults>
</compile_context>

<pallas_src>
import jax
import jax.numpy as jnp
import numpy as np
from jax.experimental import pallas as pl
from jax.experimental.pallas import tpu as pltpu


# --------------------------------------------------------------------------
# Single fused kernel: team embeds + fc1 + stacked LSTM + fc2/GLU (+ folded scale).
# No grid: one program, everything resident in VMEM.
# --------------------------------------------------------------------------
def make_fused_kernel(S, B, P, E, H, D, n_layers):
    N = S * B
    G = 4 * H
    f32 = jnp.float32
    bf16 = jnp.bfloat16

    def kernel(xteams_ref, we_ref, wd_ref, fc1_w1_ref, fc1_w2_ref, bias32_ref,
               wih_ref, whh_ref, lb_ref, fc2_w_ref, fc2_b_ref,
               out_ref, ctx_ref, hseq_ref):

        # ---------------- team set-embeds: 2 MXU pushes per team -------------
        def team_embed(team):
            x = xteams_ref[team]                                   # (P*N, F) bf16
            h = jnp.dot(x, we_ref[team], preferred_element_type=f32) + bias32_ref[team]
            h = jnp.maximum(h, 0.0)                                 # (P*N, E) f32
            pooled = h[0:N, :]                                      # player row-blocks
            for pp in range(1, P):                                  # sum; 1/P folded in wd
                pooled = pooled + h[pp * N:(pp + 1) * N, :]
            return (jnp.dot(pooled.astype(bf16), wd_ref[team],
                            preferred_element_type=f32) + bias32_ref[2 + team])  # (N, E)

        e1 = team_embed(0)
        e2 = team_embed(1)

        # ---------------- fc1 (batched over all S*B rows) --------------------
        h = (jnp.dot(e1.astype(bf16), fc1_w1_ref[0], preferred_element_type=f32)
             + jnp.dot(e2.astype(bf16), fc1_w1_ref[1], preferred_element_type=f32)
             + bias32_ref[4])
        h = jnp.maximum(h, 0.0)
        h = jnp.dot(h.astype(bf16), fc1_w2_ref[...], preferred_element_type=f32) + bias32_ref[5]
        ctx_ref[...] = jnp.maximum(h, 0.0)            # context -> VMEM scratch, (N, E) f32

        # ---------------- stacked LSTM recurrence ----------------------------
        # Hoist all weight/bias reads & broadcasts out of the unrolled loop.
        wih = [wih_ref[l] for l in range(n_layers)]                  # (in, 4H) bf16
        whh = [whh_ref[l] for l in range(n_layers)]                  # (H, 4H) bf16
        lbias = [jnp.broadcast_to(lb_ref[l], (B, G)) for l in range(n_layers)]  # (B, 4H) f32

        h_st = [jnp.zeros((B, H), f32) for _ in range(n_layers)]
        c_st = [jnp.zeros((B, H), f32) for _ in range(n_layers)]

        for t in range(S):                                           # fully unrolled, S static
            cur = ctx_ref[t * B:(t + 1) * B, :]                      # plain addressed load
            for l in range(n_layers):
                # Two back-to-back accumulating MXU pushes onto one (B, 128) gates tile
                # (v7x MRB-friendly); gate order i, f, g, o as in nn.LSTM.
                gates = (jnp.dot(cur.astype(bf16), wih[l], preferred_element_type=f32)
                         + jnp.dot(h_st[l].astype(bf16), whh[l], preferred_element_type=f32)
                         + lbias[l])
                sg = jax.nn.sigmoid(gates)                           # one EUP pass, full tile
                th = jnp.tanh(gates)                                 # one EUP pass, full tile
                i_g = sg[:, 0:H]
                f_g = sg[:, H:2 * H]
                g_g = th[:, 2 * H:3 * H]
                o_g = sg[:, 3 * H:4 * H]
                c_st[l] = f_g * c_st[l] + i_g * g_g                  # f32 VPU
                h_st[l] = o_g * jnp.tanh(c_st[l])
                cur = h_st[l]
            hseq_ref[t * B:(t + 1) * B, :] = cur                     # stash last-layer h_t

        # ---------------- fc2 + GLU (+ folded pitch scale) epilogue ----------
        h_all = hseq_ref[...]                                        # (N, H) f32
        y = (jnp.dot(h_all.astype(bf16), fc2_w_ref[...], preferred_element_type=f32)
             + fc2_b_ref[...])                                       # (N, 2D)
        out_ref[...] = y[:, 0:D] * jax.nn.sigmoid(y[:, D:2 * D])     # single store

    return kernel


# --------------------------------------------------------------------------
# Parameter init (deterministic, synthetic).  Canonical (combined) layout;
# the wrapper pre-packs / pre-folds views for the kernel.
# --------------------------------------------------------------------------
def init_params(key, n_features, embed_dim, rnn_dim, n_layers, output_dim):
    keys = list(jax.random.split(key, 32))
    ki = iter(keys)

    def w(shape, scale=0.1):
        return jax.random.normal(next(ki), shape, jnp.float32) * scale

    p = {}
    for team in ('t1', 't2'):
        p[f'{team}_we'] = w((n_features, embed_dim))
        p[f'{team}_be'] = w((1, embed_dim))
        p[f'{team}_wd'] = w((embed_dim, embed_dim))
        p[f'{team}_bd'] = w((1, embed_dim))
    p['fc1_w1'] = w((2 * embed_dim, embed_dim))
    p['fc1_b1'] = w((1, embed_dim))
    p['fc1_w2'] = w((embed_dim, embed_dim))
    p['fc1_b2'] = w((1, embed_dim))
    p['lstm'] = []
    in_dim = embed_dim
    for _ in range(n_layers):
        w_ih = w((in_dim, 4 * rnn_dim))       # stored transposed: (in, 4H), gates i,f,g,o
        w_hh = w((rnn_dim, 4 * rnn_dim))      # stored transposed: (H, 4H)
        b = w((1, 4 * rnn_dim))               # b_ih + b_hh folded together
        p['lstm'].append((w_ih, w_hh, b))
        in_dim = rnn_dim
    p['fc2_w'] = w((rnn_dim, 2 * output_dim))
    p['fc2_b'] = w((1, 2 * output_dim))
    p['ps'] = jnp.array([[108.0, 72.0]], jnp.float32)[:, :output_dim]
    return p


# --------------------------------------------------------------------------
# Forward wrapper: layout plumbing / weight packing in plain JAX, one fused launch.
# --------------------------------------------------------------------------
def pilstm_forward(p, x, n_players, n_features):
    B, S, _ = x.shape
    P, F = n_players, n_features
    E = p['fc1_w2'].shape[1]
    H = p['lstm'][0][1].shape[0]
    D = p['fc2_w'].shape[1] // 2
    n_layers = len(p['lstm'])
    N = S * B
    f32, bf16 = jnp.float32, jnp.bfloat16

    # Inputs: time-major flat rows (t*B + b), split teams, player-major row blocks.
    x_tm = jnp.transpose(x, (1, 0, 2)).reshape(N, 2 * P * F)
    t1 = x_tm[:, :P * F].reshape(N, P, F)
    t2 = x_tm[:, P * F:].reshape(N, P, F)
    x_teams = jnp.stack([t1, t2], 0).transpose(0, 2, 1, 3).reshape(2, P * N, F)

    # Packed / pre-folded weights: bf16 MXU operands, f32 biases.
    enc_we = jnp.stack([p['t1_we'], p['t2_we']], 0).astype(bf16)               # (2, F, E)
    enc_wd = (jnp.stack([p['t1_wd'], p['t2_wd']], 0) / P).astype(bf16)         # 1/P mean fold
    bias32 = jnp.stack([p['t1_be'], p['t2_be'], p['t1_bd'], p['t2_bd'],
                        p['fc1_b1'], p['fc1_b2']], 0)                          # (6, 1, E) f32
    fc1_w1 = p['fc1_w1'].reshape(2, E, E).astype(bf16)                         # halves for e1/e2
    fc1_w2 = p['fc1_w2'].astype(bf16)

    in_dims = {w_ih.shape[0] for (w_ih, _, _) in p['lstm']}
    assert len(in_dims) == 1, "packed LSTM stack assumes embed_dim == rnn_dim (see TODO)"
    lstm_wih = jnp.stack([w for (w, _, _) in p['lstm']], 0).astype(bf16)       # (L, in, 4H)
    lstm_whh = jnp.stack([w for (_, w, _) in p['lstm']], 0).astype(bf16)       # (L, H, 4H)
    lstm_b = jnp.stack([b for (_, _, b) in p['lstm']], 0)                      # (L, 1, 4H) f32

    ps = p['ps']                                                               # (1, D)
    fc2_w = jnp.concatenate([p['fc2_w'][:, :D] * ps, p['fc2_w'][:, D:]], 1).astype(bf16)
    fc2_b = jnp.concatenate([p['fc2_b'][:, :D] * ps, p['fc2_b'][:, D:]], 1)    # f32

    kernel = make_fused_kernel(S, B, P, E, H, D, n_layers)
    out = pl.pallas_call(                                   # single fused launch, no grid
        kernel,
        out_shape=jax.ShapeDtypeStruct((N, D), f32),
        scratch_shapes=[pltpu.VMEM((N, E), f32),            # context
                        pltpu.VMEM((N, H), f32)],           # last-layer h sequence
    )(x_teams.astype(bf16), enc_we, enc_wd, fc1_w1, fc1_w2, bias32,
      lstm_wih, lstm_whh, lstm_b, fc2_w, fc2_b)
    return jnp.transpose(out.reshape(S, B, D), (1, 0, 2))    # (B, S, D)


# --------------------------------------------------------------------------
# Pure-JAX f32 reference (canonical structure) for validation.
# --------------------------------------------------------------------------
def ref_forward(p, x, n_players, n_features):
    B, S, _ = x.shape
    P, F = n_players, n_features
    x_tm = jnp.transpose(x, (1, 0, 2))
    N = S * B
    t1 = x_tm[:, :, :F * P].reshape(N, P, F)
    t2 = x_tm[:, :, F * P:].reshape(N, P, F)

    def team_embed(t, we, be, wd, bd):
        h = jnp.maximum(jnp.einsum('npf,fe->npe', t, we) + be, 0.0)
        return jnp.mean(h, axis=1) @ wd + bd

    e1 = team_embed(t1, p['t1_we'], p['t1_be'], p['t1_wd'], p['t1_bd'])
    e2 = team_embed(t2, p['t2_we'], p['t2_be'], p['t2_wd'], p['t2_bd'])
    h = jnp.maximum(jnp.concatenate([e1, e2], -1) @ p['fc1_w1'] + p['fc1_b1'], 0.0)
    h = jnp.maximum(h @ p['fc1_w2'] + p['fc1_b2'], 0.0)
    E = h.shape[-1]
    x_seq = h.reshape(S, B, E)

    for (w_ih, w_hh, b) in p['lstm']:
        H = w_hh.shape[0]

        def step(carry, xt):
            hh, cc = carry
            gates = xt @ w_ih + hh @ w_hh + b[0]
            i = jax.nn.sigmoid(gates[:, :H])
            f = jax.nn.sigmoid(gates[:, H:2 * H])
            g = jnp.tanh(gates[:, 2 * H:3 * H])
            o = jax.nn.sigmoid(gates[:, 3 * H:])
            cc = f * cc + i * g
            hh = o * jnp.tanh(cc)
            return (hh, cc), hh

        h0 = jnp.zeros((B, H), jnp.float32)
        _, x_seq = jax.lax.scan(step, (h0, h0), x_seq)

    H = x_seq.shape[-1]
    y = x_seq.reshape(S * B, H) @ p['fc2_w'] + p['fc2_b']
    D = p['fc2_w'].shape[1] // 2
    out = y[:, :D] * jax.nn.sigmoid(y[:, D:]) * p['ps']
    return jnp.transpose(out.reshape(S, B, D), (1, 0, 2))


if __name__ == "__main__":
    batch, seq = 2, 8
    n_players, n_features = 5, 4
    embed_dim, rnn_dim, n_layers = 32, 32, 2
    output_dim = 2  # regressor, target_type not in {'gk','team_poss','transition'}

    key = jax.random.PRNGKey(0)
    kx, kp = jax.random.split(key)
    x = jax.random.normal(kx, (batch, seq, 2 * n_players * n_features), jnp.float32)
    params = init_params(kp, n_features, embed_dim, rnn_dim, n_layers, output_dim)

    fwd = jax.jit(pilstm_forward, static_argnums=(2, 3))
    out = jax.block_until_ready(fwd(params, x, n_players, n_features))
    assert out.shape == (batch, seq, output_dim), out.shape

    ref = ref_forward(params, x, n_players, n_features)
    # Tolerance deliberately loosened vs the f32 kernel: matmul operands are bf16
    # (MXU) while accumulation and all elementwise math remain f32 (per perf review).
    np.testing.assert_allclose(np.asarray(out), np.asarray(ref), rtol=2e-2, atol=2e-1)
    print("KERNEL_OK")
</pallas_src>

<mosaic_0001>
module attributes {stable_mosaic.version = 11 : i64} {
  func.func @kernel(%arg0: memref<2x80x4xbf16, #tpu.memory_space<vmem>>, %arg1: memref<2x4x32xbf16, #tpu.memory_space<vmem>>, %arg2: memref<2x32x32xbf16, #tpu.memory_space<vmem>>, %arg3: memref<2x32x32xbf16, #tpu.memory_space<vmem>>, %arg4: memref<32x32xbf16, #tpu.memory_space<vmem>>, %arg5: memref<6x1x32xf32, #tpu.memory_space<vmem>>, %arg6: memref<2x32x128xbf16, #tpu.memory_space<vmem>>, %arg7: memref<2x32x128xbf16, #tpu.memory_space<vmem>>, %arg8: memref<2x1x128xf32, #tpu.memory_space<vmem>>, %arg9: memref<32x4xbf16, #tpu.memory_space<vmem>>, %arg10: memref<1x4xf32, #tpu.memory_space<vmem>>, %arg11: memref<16x2xf32, #tpu.memory_space<vmem>>, %arg12: memref<16x32xf32, #tpu.memory_space<vmem>>, %arg13: memref<16x32xf32, #tpu.memory_space<vmem>>) attributes {dimension_semantics = [], scalar_prefetch = 0 : i64, scratch_operands = 2 : i64, tpu.core_type = #tpu.core_type<tc>} {
    %c0 = arith.constant 0 : index
    %c0_0 = arith.constant 0 : index
    %c0_1 = arith.constant 0 : index
    %0 = vector.load %arg0[%c0, %c0_0, %c0_1] : memref<2x80x4xbf16, #tpu.memory_space<vmem>>, vector<1x80x4xbf16>
    %1 = vector.shape_cast %0 : vector<1x80x4xbf16> to vector<80x4xbf16>
    %c0_2 = arith.constant 0 : index
    %c0_3 = arith.constant 0 : index
    %c0_4 = arith.constant 0 : index
    %2 = vector.load %arg1[%c0_2, %c0_3, %c0_4] : memref<2x4x32xbf16, #tpu.memory_space<vmem>>, vector<1x4x32xbf16>
    %3 = vector.shape_cast %2 : vector<1x4x32xbf16> to vector<4x32xbf16>
    %cst = arith.constant dense<0.000000e+00> : vector<80x32xf32>
    %4 = tpu.matmul %1, %3, %cst {dimension_numbers = #tpu.dot_dimension_numbers<[1], [0], [0], [1], [0, 0, 1, 1], [], []>} : vector<80x4xbf16>, vector<4x32xbf16>, vector<80x32xf32> -> vector<80x32xf32>
    %c0_5 = arith.constant 0 : index
    %c0_6 = arith.constant 0 : index
    %c0_7 = arith.constant 0 : index
    %5 = vector.load %arg5[%c0_5, %c0_6, %c0_7] : memref<6x1x32xf32, #tpu.memory_space<vmem>>, vector<1x1x32xf32>
    %6 = vector.shape_cast %5 : vector<1x1x32xf32> to vector<1x32xf32>
    %7 = vector.broadcast %6 : vector<1x32xf32> to vector<80x32xf32>
    %8 = arith.addf %4, %7 : vector<80x32xf32>
    %cst_8 = arith.constant 0.000000e+00 : f32
    %9 = vector.broadcast %cst_8 : f32 to vector<80x32xf32>
    %10 = arith.maximumf %8, %9 : vector<80x32xf32>
    %11 = vector.extract_strided_slice %10 {offsets = [0, 0], sizes = [16, 32], strides = [1, 1]} : vector<80x32xf32> to vector<16x32xf32>
    %12 = vector.extract_strided_slice %10 {offsets = [16, 0], sizes = [16, 32], strides = [1, 1]} : vector<80x32xf32> to vector<16x32xf32>
    %13 = arith.addf %11, %12 : vector<16x32xf32>
    %14 = vector.extract_strided_slice %10 {offsets = [32, 0], sizes = [16, 32], strides = [1, 1]} : vector<80x32xf32> to vector<16x32xf32>
    %15 = arith.addf %13, %14 : vector<16x32xf32>
    %16 = vector.extract_strided_slice %10 {offsets = [48, 0], sizes = [16, 32], strides = [1, 1]} : vector<80x32xf32> to vector<16x32xf32>
    %17 = arith.addf %15, %16 : vector<16x32xf32>
    %18 = vector.extract_strided_slice %10 {offsets = [64, 0], sizes = [16, 32], strides = [1, 1]} : vector<80x32xf32> to vector<16x32xf32>
    %19 = arith.addf %17, %18 : vector<16x32xf32>
    %20 = arith.truncf %19 : vector<16x32xf32> to vector<16x32xbf16>
    %c0_9 = arith.constant 0 : index
    %c0_10 = arith.constant 0 : index
    %c0_11 = arith.constant 0 : index
    %21 = vector.load %arg2[%c0_9, %c0_10, %c0_11] : memref<2x32x32xbf16, #tpu.memory_space<vmem>>, vector<1x32x32xbf16>
    %22 = vector.shape_cast %21 : vector<1x32x32xbf16> to vector<32x32xbf16>
    %cst_12 = arith.constant dense<0.000000e+00> : vector<16x32xf32>
    %23 = tpu.matmul %20, %22, %cst_12 {dimension_numbers = #tpu.dot_dimension_numbers<[1], [0], [0], [1], [0, 0, 1, 1], [], []>} : vector<16x32xbf16>, vector<32x32xbf16>, vector<16x32xf32> -> vector<16x32xf32>
    %c2 = arith.constant 2 : index
    %c0_13 = arith.constant 0 : index
    %c0_14 = arith.constant 0 : index
    %24 = vector.load %arg5[%c2, %c0_13, %c0_14] : memref<6x1x32xf32, #tpu.memory_space<vmem>>, vector<1x1x32xf32>
    %25 = vector.shape_cast %24 : vector<1x1x32xf32> to vector<1x32xf32>
    %26 = vector.broadcast %25 : vector<1x32xf32> to vector<16x32xf32>
    %27 = arith.addf %23, %26 : vector<16x32xf32>
    %c1 = arith.constant 1 : index
    %c0_15 = arith.constant 0 : index
    %c0_16 = arith.constant 0 : index
    %28 = vector.load %arg0[%c1, %c0_15, %c0_16] : memref<2x80x4xbf16, #tpu.memory_space<vmem>>, vector<1x80x4xbf16>
    %29 = vector.shape_cast %28 : vector<1x80x4xbf16> to vector<80x4xbf16>
    %c1_17 = arith.constant 1 : index
    %c0_18 = arith.constant 0 : index
    %c0_19 = arith.constant 0 : index
    %30 = vector.load %arg1[%c1_17, %c0_18, %c0_19] : memref<2x4x32xbf16, #tpu.memory_space<vmem>>, vector<1x4x32xbf16>
    %31 = vector.shape_cast %30 : vector<1x4x32xbf16> to vector<4x32xbf16>
    %cst_20 = arith.constant dense<0.000000e+00> : vector<80x32xf32>
    %32 = tpu.matmul %29, %31, %cst_20 {dimension_numbers = #tpu.dot_dimension_numbers<[1], [0], [0], [1], [0, 0, 1, 1], [], []>} : vector<80x4xbf16>, vector<4x32xbf16>, vector<80x32xf32> -> vector<80x32xf32>
    %c1_21 = arith.constant 1 : index
    %c0_22 = arith.constant 0 : index
    %c0_23 = arith.constant 0 : index
    %33 = vector.load %arg5[%c1_21, %c0_22, %c0_23] : memref<6x1x32xf32, #tpu.memory_space<vmem>>, vector<1x1x32xf32>
    %34 = vector.shape_cast %33 : vector<1x1x32xf32> to vector<1x32xf32>
    %35 = vector.broadcast %34 : vector<1x32xf32> to vector<80x32xf32>
    %36 = arith.addf %32, %35 : vector<80x32xf32>
    %cst_24 = arith.constant 0.000000e+00 : f32
    %37 = vector.broadcast %cst_24 : f32 to vector<80x32xf32>
    %38 = arith.maximumf %36, %37 : vector<80x32xf32>
    %39 = vector.extract_strided_slice %38 {offsets = [0, 0], sizes = [16, 32], strides = [1, 1]} : vector<80x32xf32> to vector<16x32xf32>
    %40 = vector.extract_strided_slice %38 {offsets = [16, 0], sizes = [16, 32], strides = [1, 1]} : vector<80x32xf32> to vector<16x32xf32>
    %41 = arith.addf %39, %40 : vector<16x32xf32>
    %42 = vector.extract_strided_slice %38 {offsets = [32, 0], sizes = [16, 32], strides = [1, 1]} : vector<80x32xf32> to vector<16x32xf32>
    %43 = arith.addf %41, %42 : vector<16x32xf32>
    %44 = vector.extract_strided_slice %38 {offsets = [48, 0], sizes = [16, 32], strides = [1, 1]} : vector<80x32xf32> to vector<16x32xf32>
    %45 = arith.addf %43, %44 : vector<16x32xf32>
    %46 = vector.extract_strided_slice %38 {offsets = [64, 0], sizes = [16, 32], strides = [1, 1]} : vector<80x32xf32> to vector<16x32xf32>
    %47 = arith.addf %45, %46 : vector<16x32xf32>
    %48 = arith.truncf %47 : vector<16x32xf32> to vector<16x32xbf16>
    %c1_25 = arith.constant 1 : index
    %c0_26 = arith.constant 0 : index
    %c0_27 = arith.constant 0 : index
    %49 = vector.load %arg2[%c1_25, %c0_26, %c0_27] : memref<2x32x32xbf16, #tpu.memory_space<vmem>>, vector<1x32x32xbf16>
    %50 = vector.shape_cast %49 : vector<1x32x32xbf16> to vector<32x32xbf16>
    %cst_28 = arith.constant dense<0.000000e+00> : vector<16x32xf32>
    %51 = tpu.matmul %48, %50, %cst_28 {dimension_numbers = #tpu.dot_dimension_numbers<[1], [0], [0], [1], [0, 0, 1, 1], [], []>} : vector<16x32xbf16>, vector<32x32xbf16>, vector<16x32xf32> -> vector<16x32xf32>
    %c3 = arith.constant 3 : index
    %c0_29 = arith.constant 0 : index
    %c0_30 = arith.constant 0 : index
    %52 = vector.load %arg5[%c3, %c0_29, %c0_30] : memref<6x1x32xf32, #tpu.memory_space<vmem>>, vector<1x1x32xf32>
    %53 = vector.shape_cast %52 : vector<1x1x32xf32> to vector<1x32xf32>
    %54 = vector.broadcast %53 : vector<1x32xf32> to vector<16x32xf32>
    %55 = arith.addf %51, %54 : vector<16x32xf32>
    %56 = arith.truncf %27 : vector<16x32xf32> to vector<16x32xbf16>
    %c0_31 = arith.constant 0 : index
    %c0_32 = arith.constant 0 : index
    %c0_33 = arith.constant 0 : index
    %57 = vector.load %arg3[%c0_31, %c0_32, %c0_33] : memref<2x32x32xbf16, #tpu.memory_space<vmem>>, vector<1x32x32xbf16>
    %58 = vector.shape_cast %57 : vector<1x32x32xbf16> to vector<32x32xbf16>
    %cst_34 = arith.constant dense<0.000000e+00> : vector<16x32xf32>
    %59 = tpu.matmul %56, %58, %cst_34 {dimension_numbers = #tpu.dot_dimension_numbers<[1], [0], [0], [1], [0, 0, 1, 1], [], []>} : vector<16x32xbf16>, vector<32x32xbf16>, vector<16x32xf32> -> vector<16x32xf32>
    %60 = arith.truncf %55 : vector<16x32xf32> to vector<16x32xbf16>
    %c1_35 = arith.constant 1 : index
    %c0_36 = arith.constant 0 : index
    %c0_37 = arith.constant 0 : index
    %61 = vector.load %arg3[%c1_35, %c0_36, %c0_37] : memref<2x32x32xbf16, #tpu.memory_space<vmem>>, vector<1x32x32xbf16>
    %62 = vector.shape_cast %61 : vector<1x32x32xbf16> to vector<32x32xbf16>
    %cst_38 = arith.constant dense<0.000000e+00> : vector<16x32xf32>
    %63 = tpu.matmul %60, %62, %cst_38 {dimension_numbers = #tpu.dot_dimension_numbers<[1], [0], [0], [1], [0, 0, 1, 1], [], []>} : vector<16x32xbf16>, vector<32x32xbf16>, vector<16x32xf32> -> vector<16x32xf32>
    %64 = arith.addf %59, %63 : vector<16x32xf32>
    %c4 = arith.constant 4 : index
    %c0_39 = arith.constant 0 : index
    %c0_40 = arith.constant 0 : index
    %65 = vector.load %arg5[%c4, %c0_39, %c0_40] : memref<6x1x32xf32, #tpu.memory_space<vmem>>, vector<1x1x32xf32>
    %66 = vector.shape_cast %65 : vector<1x1x32xf32> to vector<1x32xf32>
    %67 = vector.broadcast %66 : vector<1x32xf32> to vector<16x32xf32>
    %68 = arith.addf %64, %67 : vector<16x32xf32>
    %cst_41 = arith.constant 0.000000e+00 : f32
    %69 = vector.broadcast %cst_41 : f32 to vector<16x32xf32>
    %70 = arith.maximumf %68, %69 : vector<16x32xf32>
    %71 = arith.truncf %70 : vector<16x32xf32> to vector<16x32xbf16>
    %c0_42 = arith.constant 0 : index
    %c0_43 = arith.constant 0 : index
    %72 = vector.load %arg4[%c0_42, %c0_43] : memref<32x32xbf16, #tpu.memory_space<vmem>>, vector<32x32xbf16>
    %cst_44 = arith.constant dense<0.000000e+00> : vector<16x32xf32>
    %73 = tpu.matmul %71, %72, %cst_44 {dimension_numbers = #tpu.dot_dimension_numbers<[1], [0], [0], [1], [0, 0, 1, 1], [], []>} : vector<16x32xbf16>, vector<32x32xbf16>, vector<16x32xf32> -> vector<16x32xf32>
    %c5 = arith.constant 5 : index
    %c0_45 = arith.constant 0 : index
    %c0_46 = arith.constant 0 : index
    %74 = vector.load %arg5[%c5, %c0_45, %c0_46] : memref<6x1x32xf32, #tpu.memory_space<vmem>>, vector<1x1x32xf32>
    %75 = vector.shape_cast %74 : vector<1x1x32xf32> to vector<1x32xf32>
    %76 = vector.broadcast %75 : vector<1x32xf32> to vector<16x32xf32>
    %77 = arith.addf %73, %76 : vector<16x32xf32>
    %cst_47 = arith.constant 0.000000e+00 : f32
    %78 = vector.broadcast %cst_47 : f32 to vector<16x32xf32>
    %79 = arith.maximumf %77, %78 : vector<16x32xf32>
    %c0_48 = arith.constant 0 : index
    %c0_49 = arith.constant 0 : index
    %80 = vector.load %arg12[%c0_48, %c0_49] : memref<16x32xf32, #tpu.memory_space<vmem>>, vector<16x32xf32>
    tpu.vector_store %arg12[%c0_48, %c0_49], %79 {strides = array<i32>} : memref<16x32xf32, #tpu.memory_space<vmem>>, vector<16x32xf32>,
    %c0_50 = arith.constant 0 : index
    %c0_51 = arith.constant 0 : index
    %c0_52 = arith.constant 0 : index
    %81 = vector.load %arg6[%c0_50, %c0_51, %c0_52] : memref<2x32x128xbf16, #tpu.memory_space<vmem>>, vector<1x32x128xbf16>
    %82 = vector.shape_cast %81 : vector<1x32x128xbf16> to vector<32x128xbf16>
    %c1_53 = arith.constant 1 : index
    %c0_54 = arith.constant 0 : index
    %c0_55 = arith.constant 0 : index
    %83 = vector.load %arg6[%c1_53, %c0_54, %c0_55] : memref<2x32x128xbf16, #tpu.memory_space<vmem>>, vector<1x32x128xbf16>
    %84 = vector.shape_cast %83 : vector<1x32x128xbf16> to vector<32x128xbf16>
    %c0_56 = arith.constant 0 : index
    %c0_57 = arith.constant 0 : index
    %c0_58 = arith.constant 0 : index
    %85 = vector.load %arg7[%c0_56, %c0_57, %c0_58] : memref<2x32x128xbf16, #tpu.memory_space<vmem>>, vector<1x32x128xbf16>
    %86 = vector.shape_cast %85 : vector<1x32x128xbf16> to vector<32x128xbf16>
    %c1_59 = arith.constant 1 : index
    %c0_60 = arith.constant 0 : index
    %c0_61 = arith.constant 0 : index
    %87 = vector.load %arg7[%c1_59, %c0_60, %c0_61] : memref<2x32x128xbf16, #tpu.memory_space<vmem>>, vector<1x32x128xbf16>
    %88 = vector.shape_cast %87 : vector<1x32x128xbf16> to vector<32x128xbf16>
    %c0_62 = arith.constant 0 : index
    %c0_63 = arith.constant 0 : index
    %c0_64 = arith.constant 0 : index
    %89 = vector.load %arg8[%c0_62, %c0_63, %c0_64] : memref<2x1x128xf32, #tpu.memory_space<vmem>>, vector<1x1x128xf32>
    %90 = vector.shape_cast %89 : vector<1x1x128xf32> to vector<1x128xf32>
    %91 = vector.shape_cast %90 : vector<1x128xf32> to vector<1x128xf32>
    %92 = vector.broadcast %91 : vector<1x128xf32> to vector<2x128xf32>
    %c1_65 = arith.constant 1 : index
    %c0_66 = arith.constant 0 : index
    %c0_67 = arith.constant 0 : index
    %93 = vector.load %arg8[%c1_65, %c0_66, %c0_67] : memref<2x1x128xf32, #tpu.memory_space<vmem>>, vector<1x1x128xf32>
    %94 = vector.shape_cast %93 : vector<1x1x128xf32> to vector<1x128xf32>
    %95 = vector.shape_cast %94 : vector<1x128xf32> to vector<1x128xf32>
    %96 = vector.broadcast %95 : vector<1x128xf32> to vector<2x128xf32>
    %cst_68 = arith.constant 0.000000e+00 : f32
    %97 = vector.broadcast %cst_68 : f32 to vector<2x32xf32>
    %cst_69 = arith.constant 0.000000e+00 : f32
    %98 = vector.broadcast %cst_69 : f32 to vector<2x32xf32>
    %cst_70 = arith.constant 0.000000e+00 : f32
    %99 = vector.broadcast %cst_70 : f32 to vector<2x32xf32>
    %cst_71 = arith.constant 0.000000e+00 : f32
    %100 = vector.broadcast %cst_71 : f32 to vector<2x32xf32>
    %c0_72 = arith.constant 0 : index
    %c0_73 = arith.constant 0 : index
    %101 = vector.load %arg12[%c0_72, %c0_73] : memref<16x32xf32, #tpu.memory_space<vmem>>, vector<2x32xf32>
    %102 = arith.truncf %101 : vector<2x32xf32> to vector<2x32xbf16>
    %cst_74 = arith.constant dense<0.000000e+00> : vector<2x128xf32>
    %103 = tpu.matmul %102, %82, %cst_74 {dimension_numbers = #tpu.dot_dimension_numbers<[1], [0], [0], [1], [0, 0, 1, 1], [], []>} : vector<2x32xbf16>, vector<32x128xbf16>, vector<2x128xf32> -> vector<2x128xf32>
    %104 = arith.truncf %97 : vector<2x32xf32> to vector<2x32xbf16>
    %cst_75 = arith.constant dense<0.000000e+00> : vector<2x128xf32>
    %105 = tpu.matmul %104, %86, %cst_75 {dimension_numbers = #tpu.dot_dimension_numbers<[1], [0], [0], [1], [0, 0, 1, 1], [], []>} : vector<2x32xbf16>, vector<32x128xbf16>, vector<2x128xf32> -> vector<2x128xf32>
    %106 = arith.addf %103, %105 : vector<2x128xf32>
    %107 = arith.addf %106, %92 : vector<2x128xf32>
    %108 = arith.negf %107 : vector<2x128xf32>
    %109 = math.exp %108 : vector<2x128xf32>
    %cst_76 = arith.constant 1.000000e+00 : f32
    %110 = vector.broadcast %cst_76 : f32 to vector<2x128xf32>
    %111 = arith.addf %110, %109 : vector<2x128xf32>
    %112 = arith.divf %110, %111 : vector<2x128xf32>
    %113 = math.tanh %107 : vector<2x128xf32>
    %114 = vector.extract_strided_slice %112 {offsets = [0, 0], sizes = [2, 32], strides = [1, 1]} : vector<2x128xf32> to vector<2x32xf32>
    %115 = vector.extract_strided_slice %112 {offsets = [0, 32], sizes = [2, 32], strides = [1, 1]} : vector<2x128xf32> to vector<2x32xf32>
    %116 = vector.extract_strided_slice %113 {offsets = [0, 64], sizes = [2, 32], strides = [1, 1]} : vector<2x128xf32> to vector<2x32xf32>
    %117 = vector.extract_strided_slice %112 {offsets = [0, 96], sizes = [2, 32], strides = [1, 1]} : vector<2x128xf32> to vector<2x32xf32>
    %118 = arith.mulf %115, %99 : vector<2x32xf32>
    %119 = arith.mulf %114, %116 : vector<2x32xf32>
    %120 = arith.addf %118, %119 : vector<2x32xf32>
    %121 = math.tanh %120 : vector<2x32xf32>
    %122 = arith.mulf %117, %121 : vector<2x32xf32>
    %123 = arith.truncf %122 : vector<2x32xf32> to vector<2x32xbf16>
    %cst_77 = arith.constant dense<0.000000e+00> : vector<2x128xf32>
    %124 = tpu.matmul %123, %84, %cst_77 {dimension_numbers = #tpu.dot_dimension_numbers<[1], [0], [0], [1], [0, 0, 1, 1], [], []>} : vector<2x32xbf16>, vector<32x128xbf16>, vector<2x128xf32> -> vector<2x128xf32>
    %125 = arith.truncf %98 : vector<2x32xf32> to vector<2x32xbf16>
    %cst_78 = arith.constant dense<0.000000e+00> : vector<2x128xf32>
    %126 = tpu.matmul %125, %88, %cst_78 {dimension_numbers = #tpu.dot_dimension_numbers<[1], [0], [0], [1], [0, 0, 1, 1], [], []>} : vector<2x32xbf16>, vector<32x128xbf16>, vector<2x128xf32> -> vector<2x128xf32>
    %127 = arith.addf %124, %126 : vector<2x128xf32>
    %128 = arith.addf %127, %96 : vector<2x128xf32>
    %129 = arith.negf %128 : vector<2x128xf32>
    %130 = math.exp %129 : vector<2x128xf32>
    %cst_79 = arith.constant 1.000000e+00 : f32
    %131 = vector.broadcast %cst_79 : f32 to vector<2x128xf32>
    %132 = arith.addf %131, %130 : vector<2x128xf32>
    %133 = arith.divf %131, %132 : vector<2x128xf32>
    %134 = math.tanh %128 : vector<2x128xf32>
    %135 = vector.extract_strided_slice %133 {offsets = [0, 0], sizes = [2, 32], strides = [1, 1]} : vector<2x128xf32> to vector<2x32xf32>
    %136 = vector.extract_strided_slice %133 {offsets = [0, 32], sizes = [2, 32], strides = [1, 1]} : vector<2x128xf32> to vector<2x32xf32>
    %137 = vector.extract_strided_slice %134 {offsets = [0, 64], sizes = [2, 32], strides = [1, 1]} : vector<2x128xf32> to vector<2x32xf32>
    %138 = vector.extract_strided_slice %133 {offsets = [0, 96], sizes = [2, 32], strides = [1, 1]} : vector<2x128xf32> to vector<2x32xf32>
    %139 = arith.mulf %136, %100 : vector<2x32xf32>
    %140 = arith.mulf %135, %137 : vector<2x32xf32>
    %141 = arith.addf %139, %140 : vector<2x32xf32>
    %142 = math.tanh %141 : vector<2x32xf32>
    %143 = arith.mulf %138, %142 : vector<2x32xf32>
    %c0_80 = arith.constant 0 : index
    %c0_81 = arith.constant 0 : index
    %144 = vector.load %arg13[%c0_80, %c0_81] : memref<16x32xf32, #tpu.memory_space<vmem>>, vector<2x32xf32>
    tpu.vector_store %arg13[%c0_80, %c0_81], %143 {strides = array<i32>} : memref<16x32xf32, #tpu.memory_space<vmem>>, vector<2x32xf32>,
    %c2_82 = arith.constant 2 : index
    %c0_83 = arith.constant 0 : index
    %145 = vector.load %arg12[%c2_82, %c0_83] : memref<16x32xf32, #tpu.memory_space<vmem>>, vector<2x32xf32>
    %146 = arith.truncf %145 : vector<2x32xf32> to vector<2x32xbf16>
    %cst_84 = arith.constant dense<0.000000e+00> : vector<2x128xf32>
    %147 = tpu.matmul %146, %82, %cst_84 {dimension_numbers = #tpu.dot_dimension_numbers<[1], [0], [0], [1], [0, 0, 1, 1], [], []>} : vector<2x32xbf16>, vector<32x128xbf16>, vector<2x128xf32> -> vector<2x128xf32>
    %148 = arith.truncf %122 : vector<2x32xf32> to vector<2x32xbf16>
    %cst_85 = arith.constant dense<0.000000e+00> : vector<2x128xf32>
    %149 = tpu.matmul %148, %86, %cst_85 {dimension_numbers = #tpu.dot_dimension_numbers<[1], [0], [0], [1], [0, 0, 1, 1], [], []>} : vector<2x32xbf16>, vector<32x128xbf16>, vector<2x128xf32> -> vector<2x128xf32>
    %150 = arith.addf %147, %149 : vector<2x128xf32>
    %151 = arith.addf %150, %92 : vector<2x128xf32>
    %152 = arith.negf %151 : vector<2x128xf32>
    %153 = math.exp %152 : vector<2x128xf32>
    %cst_86 = arith.constant 1.000000e+00 : f32
    %154 = vector.broadcast %cst_86 : f32 to vector<2x128xf32>
    %155 = arith.addf %154, %153 : vector<2x128xf32>
    %156 = arith.divf %154, %155 : vector<2x128xf32>
    %157 = math.tanh %151 : vector<2x128xf32>
    %158 = vector.extract_strided_slice %156 {offsets = [0, 0], sizes = [2, 32], strides = [1, 1]} : vector<2x128xf32> to vector<2x32xf32>
    %159 = vector.extract_strided_slice %156 {offsets = [0, 32], sizes = [2, 32], strides = [1, 1]} : vector<2x128xf32> to vector<2x32xf32>
    %160 = vector.extract_strided_slice %157 {offsets = [0, 64], sizes = [2, 32], strides = [1, 1]} : vector<2x128xf32> to vector<2x32xf32>
    %161 = vector.extract_strided_slice %156 {offsets = [0, 96], sizes = [2, 32], strides = [1, 1]} : vector<2x128xf32> to vector<2x32xf32>
    %162 = arith.mulf %159, %120 : vector<2x32xf32>
    %163 = arith.mulf %158, %160 : vector<2x32xf32>
    %164 = arith.addf %162, %163 : vector<2x32xf32>
    %165 = math.tanh %164 : vector<2x32xf32>
    %166 = arith.mulf %161, %165 : vector<2x32xf32>
    %167 = arith.truncf %166 : vector<2x32xf32> to vector<2x32xbf16>
    %cst_87 = arith.constant dense<0.000000e+00> : vector<2x128xf32>
    %168 = tpu.matmul %167, %84, %cst_87 {dimension_numbers = #tpu.dot_dimension_numbers<[1], [0], [0], [1], [0, 0, 1, 1], [], []>} : vector<2x32xbf16>, vector<32x128xbf16>, vector<2x128xf32> -> vector<2x128xf32>
    %169 = arith.truncf %143 : vector<2x32xf32> to vector<2x32xbf16>
    %cst_88 = arith.constant dense<0.000000e+00> : vector<2x128xf32>
    %170 = tpu.matmul %169, %88, %cst_88 {dimension_numbers = #tpu.dot_dimension_numbers<[1], [0], [0], [1], [0, 0, 1, 1], [], []>} : vector<2x32xbf16>, vector<32x128xbf16>, vector<2x128xf32> -> vector<2x128xf32>
    %171 = arith.addf %168, %170 : vector<2x128xf32>
    %172 = arith.addf %171, %96 : vector<2x128xf32>
    %173 = arith.negf %172 : vector<2x128xf32>
    %174 = math.exp %173 : vector<2x128xf32>
    %cst_89 = arith.constant 1.000000e+00 : f32
    %175 = vector.broadcast %cst_89 : f32 to vector<2x128xf32>
    %176 = arith.addf %175, %174 : vector<2x128xf32>
    %177 = arith.divf %175, %176 : vector<2x128xf32>
    %178 = math.tanh %172 : vector<2x128xf32>
    %179 = vector.extract_strided_slice %177 {offsets = [0, 0], sizes = [2, 32], strides = [1, 1]} : vector<2x128xf32> to vector<2x32xf32>
    %180 = vector.extract_strided_slice %177 {offsets = [0, 32], sizes = [2, 32], strides = [1, 1]} : vector<2x128xf32> to vector<2x32xf32>
    %181 = vector.extract_strided_slice %178 {offsets = [0, 64], sizes = [2, 32], strides = [1, 1]} : vector<2x128xf32> to vector<2x32xf32>
    %182 = vector.extract_strided_slice %177 {offsets = [0, 96], sizes = [2, 32], strides = [1, 1]} : vector<2x128xf32> to vector<2x32xf32>
    %183 = arith.mulf %180, %141 : vector<2x32xf32>
    %184 = arith.mulf %179, %181 : vector<2x32xf32>
    %185 = arith.addf %183, %184 : vector<2x32xf32>
    %186 = math.tanh %185 : vector<2x32xf32>
    %187 = arith.mulf %182, %186 : vector<2x32xf32>
    %c2_90 = arith.constant 2 : index
    %c0_91 = arith.constant 0 : index
    %188 = vector.load %arg13[%c2_90, %c0_91] : memref<16x32xf32, #tpu.memory_space<vmem>>, vector<2x32xf32>
    tpu.vector_store %arg13[%c2_90, %c0_91], %187 {strides = array<i32>} : memref<16x32xf32, #tpu.memory_space<vmem>>, vector<2x32xf32>,
    %c4_92 = arith.constant 4 : index
    %c0_93 = arith.constant 0 : index
    %189 = vector.load %arg12[%c4_92, %c0_93] : memref<16x32xf32, #tpu.memory_space<vmem>>, vector<2x32xf32>
    %190 = arith.truncf %189 : vector<2x32xf32> to vector<2x32xbf16>
    %cst_94 = arith.constant dense<0.000000e+00> : vector<2x128xf32>
    %191 = tpu.matmul %190, %82, %cst_94 {dimension_numbers = #tpu.dot_dimension_numbers<[1], [0], [0], [1], [0, 0, 1, 1], [], []>} : vector<2x32xbf16>, vector<32x128xbf16>, vector<2x128xf32> -> vector<2x128xf32>
    %192 = arith.truncf %166 : vector<2x32xf32> to vector<2x32xbf16>
    %cst_95 = arith.constant dense<0.000000e+00> : vector<2x128xf32>
    %193 = tpu.matmul %192, %86, %cst_95 {dimension_numbers = #tpu.dot_dimension_numbers<[1], [0], [0], [1], [0, 0, 1, 1], [], []>} : vector<2x32xbf16>, vector<32x128xbf16>, vector<2x128xf32> -> vector<2x128xf32>
    %194 = arith.addf %191, %193 : vector<2x128xf32>
    %195 = arith.addf %194, %92 : vector<2x128xf32>
    %196 = arith.negf %195 : vector<2x128xf32>
    %197 = math.exp %196 : vector<2x128xf32>
    %cst_96 = arith.constant 1.000000e+00 : f32
    %198 = vector.broadcast %cst_96 : f32 to vector<2x128xf32>
    %199 = arith.addf %198, %197 : vector<2x128xf32>
    %200 = arith.divf %198, %199 : vector<2x128xf32>
    %201 = math.tanh %195 : vector<2x128xf32>
    %202 = vector.extract_strided_slice %200 {offsets = [0, 0], sizes = [2, 32], strides = [1, 1]} : vector<2x128xf32> to vector<2x32xf32>
    %203 = vector.extract_strided_slice %200 {offsets = [0, 32], sizes = [2, 32], strides = [1, 1]} : vector<2x128xf32> to vector<2x32xf32>
    %204 = vector.extract_strided_slice %201 {offsets = [0, 64], sizes = [2, 32], strides = [1, 1]} : vector<2x128xf32> to vector<2x32xf32>
    %205 = vector.extract_strided_slice %200 {offsets = [0, 96], sizes = [2, 32], strides = [1, 1]} : vector<2x128xf32> to vector<2x32xf32>
    %206 = arith.mulf %203, %164 : vector<2x32xf32>
    %207 = arith.mulf %202, %204 : vector<2x32xf32>
    %208 = arith.addf %206, %207 : vector<2x32xf32>
    %209 = math.tanh %208 : vector<2x32xf32>
    %210 = arith.mulf %205, %209 : vector<2x32xf32>
    %211 = arith.truncf %210 : vector<2x32xf32> to vector<2x32xbf16>
    %cst_97 = arith.constant dense<0.000000e+00> : vector<2x128xf32>
    %212 = tpu.matmul %211, %84, %cst_97 {dimension_numbers = #tpu.dot_dimension_numbers<[1], [0], [0], [1], [0, 0, 1, 1], [], []>} : vector<2x32xbf16>, vector<32x128xbf16>, vector<2x128xf32> -> vector<2x128xf32>
    %213 = arith.truncf %187 : vector<2x32xf32> to vector<2x32xbf16>
    %cst_98 = arith.constant dense<0.000000e+00> : vector<2x128xf32>
    %214 = tpu.matmul %213, %88, %cst_98 {dimension_numbers = #tpu.dot_dimension_numbers<[1], [0], [0], [1], [0, 0, 1, 1], [], []>} : vector<2x32xbf16>, vector<32x128xbf16>, vector<2x128xf32> -> vector<2x128xf32>
    %215 = arith.addf %212, %214 : vector<2x128xf32>
    %216 = arith.addf %215, %96 : vector<2x128xf32>
    %217 = arith.negf %216 : vector<2x128xf32>
    %218 = math.exp %217 : vector<2x128xf32>
    %cst_99 = arith.constant 1.000000e+00 : f32
    %219 = vector.broadcast %cst_99 : f32 to vector<2x128xf32>
    %220 = arith.addf %219, %218 : vector<2x128xf32>
    %221 = arith.divf %219, %220 : vector<2x128xf32>
    %222 = math.tanh %216 : vector<2x128xf32>
    %223 = vector.extract_strided_slice %221 {offsets = [0, 0], sizes = [2, 32], strides = [1, 1]} : vector<2x128xf32> to vector<2x32xf32>
    %224 = vector.extract_strided_slice %221 {offsets = [0, 32], sizes = [2, 32], strides = [1, 1]} : vector<2x128xf32> to vector<2x32xf32>
    %225 = vector.extract_strided_slice %222 {offsets = [0, 64], sizes = [2, 32], strides = [1, 1]} : vector<2x128xf32> to vector<2x32xf32>
    %226 = vector.extract_strided_slice %221 {offsets = [0, 96], sizes = [2, 32], strides = [1, 1]} : vector<2x128xf32> to vector<2x32xf32>
    %227 = arith.mulf %224, %185 : vector<2x32xf32>
    %228 = arith.mulf %223, %225 : vector<2x32xf32>
    %229 = arith.addf %227, %228 : vector<2x32xf32>
    %230 = math.tanh %229 : vector<2x32xf32>
    %231 = arith.mulf %226, %230 : vector<2x32xf32>
    %c4_100 = arith.constant 4 : index
    %c0_101 = arith.constant 0 : index
    %232 = vector.load %arg13[%c4_100, %c0_101] : memref<16x32xf32, #tpu.memory_space<vmem>>, vector<2x32xf32>
    tpu.vector_store %arg13[%c4_100, %c0_101], %231 {strides = array<i32>} : memref<16x32xf32, #tpu.memory_space<vmem>>, vector<2x32xf32>,
    %c6 = arith.constant 6 : index
    %c0_102 = arith.constant 0 : index
    %233 = vector.load %arg12[%c6, %c0_102] : memref<16x32xf32, #tpu.memory_space<vmem>>, vector<2x32xf32>
    %234 = arith.truncf %233 : vector<2x32xf32> to vector<2x32xbf16>
    %cst_103 = arith.constant dense<0.000000e+00> : vector<2x128xf32>
    %235 = tpu.matmul %234, %82, %cst_103 {dimension_numbers = #tpu.dot_dimension_numbers<[1], [0], [0], [1], [0, 0, 1, 1], [], []>} : vector<2x32xbf16>, vector<32x128xbf16>, vector<2x128xf32> -> vector<2x128xf32>
    %236 = arith.truncf %210 : vector<2x32xf32> to vector<2x32xbf16>
    %cst_104 = arith.constant dense<0.000000e+00> : vector<2x128xf32>
    %237 = tpu.matmul %236, %86, %cst_104 {dimension_numbers = #tpu.dot_dimension_numbers<[1], [0], [0], [1], [0, 0, 1, 1], [], []>} : vector<2x32xbf16>, vector<32x128xbf16>, vector<2x128xf32> -> vector<2x128xf32>
    %238 = arith.addf %235, %237 : vector<2x128xf32>
    %239 = arith.addf %238, %92 : vector<2x128xf32>
    %240 = arith.negf %239 : vector<2x128xf32>
    %241 = math.exp %240 : vector<2x128xf32>
    %cst_105 = arith.constant 1.000000e+00 : f32
    %242 = vector.broadcast %cst_105 : f32 to vector<2x128xf32>
    %243 = arith.addf %242, %241 : vector<2x128xf32>
    %244 = arith.divf %242, %243 : vector<2x128xf32>
    %245 = math.tanh %239 : vector<2x128xf32>
    %246 = vector.extract_strided_slice %244 {offsets = [0, 0], sizes = [2, 32], strides = [1, 1]} : vector<2x128xf32> to vector<2x32xf32>
    %247 = vector.extract_strided_slice %244 {offsets = [0, 32], sizes = [2, 32], strides = [1, 1]} : vector<2x128xf32> to vector<2x32xf32>
    %248 = vector.extract_strided_slice %245 {offsets = [0, 64], sizes = [2, 32], strides = [1, 1]} : vector<2x128xf32> to vector<2x32xf32>
    %249 = vector.extract_strided_slice %244 {offsets = [0, 96], sizes = [2, 32], strides = [1, 1]} : vector<2x128xf32> to vector<2x32xf32>
    %250 = arith.mulf %247, %208 : vector<2x32xf32>
    %251 = arith.mulf %246, %248 : vector<2x32xf32>
    %252 = arith.addf %250, %251 : vector<2x32xf32>
    %253 = math.tanh %252 : vector<2x32xf32>
    %254 = arith.mulf %249, %253 : vector<2x32xf32>
    %255 = arith.truncf %254 : vector<2x32xf32> to vector<2x32xbf16>
    %cst_106 = arith.constant dense<0.000000e+00> : vector<2x128xf32>
    %256 = tpu.matmul %255, %84, %cst_106 {dimension_numbers = #tpu.dot_dimension_numbers<[1], [0], [0], [1], [0, 0, 1, 1], [], []>} : vector<2x32xbf16>, vector<32x128xbf16>, vector<2x128xf32> -> vector<2x128xf32>
    %257 = arith.truncf %231 : vector<2x32xf32> to vector<2x32xbf16>
    %cst_107 = arith.constant dense<0.000000e+00> : vector<2x128xf32>
    %258 = tpu.matmul %257, %88, %cst_107 {dimension_numbers = #tpu.dot_dimension_numbers<[1], [0], [0], [1], [0, 0, 1, 1], [], []>} : vector<2x32xbf16>, vector<32x128xbf16>, vector<2x128xf32> -> vector<2x128xf32>
    %259 = arith.addf %256, %258 : vector<2x128xf32>
    %260 = arith.addf %259, %96 : vector<2x128xf32>
    %261 = arith.negf %260 : vector<2x128xf32>
    %262 = math.exp %261 : vector<2x128xf32>
    %cst_108 = arith.constant 1.000000e+00 : f32
    %263 = vector.broadcast %cst_108 : f32 to vector<2x128xf32>
    %264 = arith.addf %263, %262 : vector<2x128xf32>
    %265 = arith.divf %263, %264 : vector<2x128xf32>
    %266 = math.tanh %260 : vector<2x128xf32>
    %267 = vector.extract_strided_slice %265 {offsets = [0, 0], sizes = [2, 32], strides = [1, 1]} : vector<2x128xf32> to vector<2x32xf32>
    %268 = vector.extract_strided_slice %265 {offsets = [0, 32], sizes = [2, 32], strides = [1, 1]} : vector<2x128xf32> to vector<2x32xf32>
    %269 = vector.extract_strided_slice %266 {offsets = [0, 64], sizes = [2, 32], strides = [1, 1]} : vector<2x128xf32> to vector<2x32xf32>
    %270 = vector.extract_strided_slice %265 {offsets = [0, 96], sizes = [2, 32], strides = [1, 1]} : vector<2x128xf32> to vector<2x32xf32>
    %271 = arith.mulf %268, %229 : vector<2x32xf32>
    %272 = arith.mulf %267, %269 : vector<2x32xf32>
    %273 = arith.addf %271, %272 : vector<2x32xf32>
    %274 = math.tanh %273 : vector<2x32xf32>
    %275 = arith.mulf %270, %274 : vector<2x32xf32>
    %c6_109 = arith.constant 6 : index
    %c0_110 = arith.constant 0 : index
    %276 = vector.load %arg13[%c6_109, %c0_110] : memref<16x32xf32, #tpu.memory_space<vmem>>, vector<2x32xf32>
    tpu.vector_store %arg13[%c6_109, %c0_110], %275 {strides = array<i32>} : memref<16x32xf32, #tpu.memory_space<vmem>>, vector<2x32xf32>,
    %c8 = arith.constant 8 : index
    %c0_111 = arith.constant 0 : index
    %277 = vector.load %arg12[%c8, %c0_111] : memref<16x32xf32, #tpu.memory_space<vmem>>, vector<2x32xf32>
    %278 = arith.truncf %277 : vector<2x32xf32> to vector<2x32xbf16>
    %cst_112 = arith.constant dense<0.000000e+00> : vector<2x128xf32>
    %279 = tpu.matmul %278, %82, %cst_112 {dimension_numbers = #tpu.dot_dimension_numbers<[1], [0], [0], [1], [0, 0, 1, 1], [], []>} : vector<2x32xbf16>, vector<32x128xbf16>, vector<2x128xf32> -> vector<2x128xf32>
    %280 = arith.truncf %254 : vector<2x32xf32> to vector<2x32xbf16>
    %cst_113 = arith.constant dense<0.000000e+00> : vector<2x128xf32>
    %281 = tpu.matmul %280, %86, %cst_113 {dimension_numbers = #tpu.dot_dimension_numbers<[1], [0], [0], [1], [0, 0, 1, 1], [], []>} : vector<2x32xbf16>, vector<32x128xbf16>, vector<2x128xf32> -> vector<2x128xf32>
    %282 = arith.addf %279, %281 : vector<2x128xf32>
    %283 = arith.addf %282, %92 : vector<2x128xf32>
    %284 = arith.negf %283 : vector<2x128xf32>
    %285 = math.exp %284 : vector<2x128xf32>
    %cst_114 = arith.constant 1.000000e+00 : f32
    %286 = vector.broadcast %cst_114 : f32 to vector<2x128xf32>
    %287 = arith.addf %286, %285 : vector<2x128xf32>
    %288 = arith.divf %286, %287 : vector<2x128xf32>
    %289 = math.tanh %283 : vector<2x128xf32>
    %290 = vector.extract_strided_slice %288 {offsets = [0, 0], sizes = [2, 32], strides = [1, 1]} : vector<2x128xf32> to vector<2x32xf32>
    %291 = vector.extract_strided_slice %288 {offsets = [0, 32], sizes = [2, 32], strides = [1, 1]} : vector<2x128xf32> to vector<2x32xf32>
    %292 = vector.extract_strided_slice %289 {offsets = [0, 64], sizes = [2, 32], strides = [1, 1]} : vector<2x128xf32> to vector<2x32xf32>
    %293 = vector.extract_strided_slice %288 {offsets = [0, 96], sizes = [2, 32], strides = [1, 1]} : vector<2x128xf32> to vector<2x32xf32>
    %294 = arith.mulf %291, %252 : vector<2x32xf32>
    %295 = arith.mulf %290, %292 : vector<2x32xf32>
    %296 = arith.addf %294, %295 : vector<2x32xf32>
    %297 = math.tanh %296 : vector<2x32xf32>
    %298 = arith.mulf %293, %297 : vector<2x32xf32>
    %299 = arith.truncf %298 : vector<2x32xf32> to vector<2x32xbf16>
    %cst_115 = arith.constant dense<0.000000e+00> : vector<2x128xf32>
    %300 = tpu.matmul %299, %84, %cst_115 {dimension_numbers = #tpu.dot_dimension_numbers<[1], [0], [0], [1], [0, 0, 1, 1], [], []>} : vector<2x32xbf16>, vector<32x128xbf16>, vector<2x128xf32> -> vector<2x128xf32>
    %301 = arith.truncf %275 : vector<2x32xf32> to vector<2x32xbf16>
    %cst_116 = arith.constant dense<0.000000e+00> : vector<2x128xf32>
    %302 = tpu.matmul %301, %88, %cst_116 {dimension_numbers = #tpu.dot_dimension_numbers<[1], [0], [0], [1], [0, 0, 1, 1], [], []>} : vector<2x32xbf16>, vector<32x128xbf16>, vector<2x128xf32> -> vector<2x128xf32>
    %303 = arith.addf %300, %302 : vector<2x128xf32>
    %304 = arith.addf %303, %96 : vector<2x128xf32>
    %305 = arith.negf %304 : vector<2x128xf32>
    %306 = math.exp %305 : vector<2x128xf32>
    %cst_117 = arith.constant 1.000000e+00 : f32
    %307 = vector.broadcast %cst_117 : f32 to vector<2x128xf32>
    %308 = arith.addf %307, %306 : vector<2x128xf32>
    %309 = arith.divf %307, %308 : vector<2x128xf32>
    %310 = math.tanh %304 : vector<2x128xf32>
    %311 = vector.extract_strided_slice %309 {offsets = [0, 0], sizes = [2, 32], strides = [1, 1]} : vector<2x128xf32> to vector<2x32xf32>
    %312 = vector.extract_strided_slice %309 {offsets = [0, 32], sizes = [2, 32], strides = [1, 1]} : vector<2x128xf32> to vector<2x32xf32>
    %313 = vector.extract_strided_slice %310 {offsets = [0, 64], sizes = [2, 32], strides = [1, 1]} : vector<2x128xf32> to vector<2x32xf32>
    %314 = vector.extract_strided_slice %309 {offsets = [0, 96], sizes = [2, 32], strides = [1, 1]} : vector<2x128xf32> to vector<2x32xf32>
    %315 = arith.mulf %312, %273 : vector<2x32xf32>
    %316 = arith.mulf %311, %313 : vector<2x32xf32>
    %317 = arith.addf %315, %316 : vector<2x32xf32>
    %318 = math.tanh %317 : vector<2x32xf32>
    %319 = arith.mulf %314, %318 : vector<2x32xf32>
    %c8_118 = arith.constant 8 : index
    %c0_119 = arith.constant 0 : index
    %320 = vector.load %arg13[%c8_118, %c0_119] : memref<16x32xf32, #tpu.memory_space<vmem>>, vector<2x32xf32>
    tpu.vector_store %arg13[%c8_118, %c0_119], %319 {strides = array<i32>} : memref<16x32xf32, #tpu.memory_space<vmem>>, vector<2x32xf32>,
    %c10 = arith.constant 10 : index
    %c0_120 = arith.constant 0 : index
    %321 = vector.load %arg12[%c10, %c0_120] : memref<16x32xf32, #tpu.memory_space<vmem>>, vector<2x32xf32>
    %322 = arith.truncf %321 : vector<2x32xf32> to vector<2x32xbf16>
    %cst_121 = arith.constant dense<0.000000e+00> : vector<2x128xf32>
    %323 = tpu.matmul %322, %82, %cst_121 {dimension_numbers = #tpu.dot_dimension_numbers<[1], [0], [0], [1], [0, 0, 1, 1], [], []>} : vector<2x32xbf16>, vector<32x128xbf16>, vector<2x128xf32> -> vector<2x128xf32>
    %324 = arith.truncf %298 : vector<2x32xf32> to vector<2x32xbf16>
    %cst_122 = arith.constant dense<0.000000e+00> : vector<2x128xf32>
    %325 = tpu.matmul %324, %86, %cst_122 {dimension_numbers = #tpu.dot_dimension_numbers<[1], [0], [0], [1], [0, 0, 1, 1], [], []>} : vector<2x32xbf16>, vector<32x128xbf16>, vector<2x128xf32> -> vector<2x128xf32>
    %326 = arith.addf %323, %325 : vector<2x128xf32>
    %327 = arith.addf %326, %92 : vector<2x128xf32>
    %328 = arith.negf %327 : vector<2x128xf32>
    %329 = math.exp %328 : vector<2x128xf32>
    %cst_123 = arith.constant 1.000000e+00 : f32
    %330 = vector.broadcast %cst_123 : f32 to vector<2x128xf32>
    %331 = arith.addf %330, %329 : vector<2x128xf32>
    %332 = arith.divf %330, %331 : vector<2x128xf32>
    %333 = math.tanh %327 : vector<2x128xf32>
    %334 = vector.extract_strided_slice %332 {offsets = [0, 0], sizes = [2, 32], strides = [1, 1]} : vector<2x128xf32> to vector<2x32xf32>
    %335 = vector.extract_strided_slice %332 {offsets = [0, 32], sizes = [2, 32], strides = [1, 1]} : vector<2x128xf32> to vector<2x32xf32>
    %336 = vector.extract_strided_slice %333 {offsets = [0, 64], sizes = [2, 32], strides = [1, 1]} : vector<2x128xf32> to vector<2x32xf32>
    %337 = vector.extract_strided_slice %332 {offsets = [0, 96], sizes = [2, 32], strides = [1, 1]} : vector<2x128xf32> to vector<2x32xf32>
    %338 = arith.mulf %335, %296 : vector<2x32xf32>
    %339 = arith.mulf %334, %336 : vector<2x32xf32>
    %340 = arith.addf %338, %339 : vector<2x32xf32>
    %341 = math.tanh %340 : vector<2x32xf32>
    %342 = arith.mulf %337, %341 : vector<2x32xf32>
    %343 = arith.truncf %342 : vector<2x32xf32> to vector<2x32xbf16>
    %cst_124 = arith.constant dense<0.000000e+00> : vector<2x128xf32>
    %344 = tpu.matmul %343, %84, %cst_124 {dimension_numbers = #tpu.dot_dimension_numbers<[1], [0], [0], [1], [0, 0, 1, 1], [], []>} : vector<2x32xbf16>, vector<32x128xbf16>, vector<2x128xf32> -> vector<2x128xf32>
    %345 = arith.truncf %319 : vector<2x32xf32> to vector<2x32xbf16>
    %cst_125 = arith.constant dense<0.000000e+00> : vector<2x128xf32>
    %346 = tpu.matmul %345, %88, %cst_125 {dimension_numbers = #tpu.dot_dimension_numbers<[1], [0], [0], [1], [0, 0, 1, 1], [], []>} : vector<2x32xbf16>, vector<32x128xbf16>, vector<2x128xf32> -> vector<2x128xf32>
    %347 = arith.addf %344, %346 : vector<2x128xf32>
    %348 = arith.addf %347, %96 : vector<2x128xf32>
    %349 = arith.negf %348 : vector<2x128xf32>
    %350 = math.exp %349 : vector<2x128xf32>
    %cst_126 = arith.constant 1.000000e+00 : f32
    %351 = vector.broadcast %cst_126 : f32 to vector<2x128xf32>
    %352 = arith.addf %351, %350 : vector<2x128xf32>
    %353 = arith.divf %351, %352 : vector<2x128xf32>
    %354 = math.tanh %348 : vector<2x128xf32>
    %355 = vector.extract_strided_slice %353 {offsets = [0, 0], sizes = [2, 32], strides = [1, 1]} : vector<2x128xf32> to vector<2x32xf32>
    %356 = vector.extract_strided_slice %353 {offsets = [0, 32], sizes = [2, 32], strides = [1, 1]} : vector<2x128xf32> to vector<2x32xf32>
    %357 = vector.extract_strided_slice %354 {offsets = [0, 64], sizes = [2, 32], strides = [1, 1]} : vector<2x128xf32> to vector<2x32xf32>
    %358 = vector.extract_strided_slice %353 {offsets = [0, 96], sizes = [2, 32], strides = [1, 1]} : vector<2x128xf32> to vector<2x32xf32>
    %359 = arith.mulf %356, %317 : vector<2x32xf32>
    %360 = arith.mulf %355, %357 : vector<2x32xf32>
    %361 = arith.addf %359, %360 : vector<2x32xf32>
    %362 = math.tanh %361 : vector<2x32xf32>
    %363 = arith.mulf %358, %362 : vector<2x32xf32>
    %c10_127 = arith.constant 10 : index
    %c0_128 = arith.constant 0 : index
    %364 = vector.load %arg13[%c10_127, %c0_128] : memref<16x32xf32, #tpu.memory_space<vmem>>, vector<2x32xf32>
    tpu.vector_store %arg13[%c10_127, %c0_128], %363 {strides = array<i32>} : memref<16x32xf32, #tpu.memory_space<vmem>>, vector<2x32xf32>,
    %c12 = arith.constant 12 : index
    %c0_129 = arith.constant 0 : index
    %365 = vector.load %arg12[%c12, %c0_129] : memref<16x32xf32, #tpu.memory_space<vmem>>, vector<2x32xf32>
    %366 = arith.truncf %365 : vector<2x32xf32> to vector<2x32xbf16>
    %cst_130 = arith.constant dense<0.000000e+00> : vector<2x128xf32>
    %367 = tpu.matmul %366, %82, %cst_130 {dimension_numbers = #tpu.dot_dimension_numbers<[1], [0], [0], [1], [0, 0, 1, 1], [], []>} : vector<2x32xbf16>, vector<32x128xbf16>, vector<2x128xf32> -> vector<2x128xf32>
    %368 = arith.truncf %342 : vector<2x32xf32> to vector<2x32xbf16>
    %cst_131 = arith.constant dense<0.000000e+00> : vector<2x128xf32>
    %369 = tpu.matmul %368, %86, %cst_131 {dimension_numbers = #tpu.dot_dimension_numbers<[1], [0], [0], [1], [0, 0, 1, 1], [], []>} : vector<2x32xbf16>, vector<32x128xbf16>, vector<2x128xf32> -> vector<2x128xf32>
    %370 = arith.addf %367, %369 : vector<2x128xf32>
    %371 = arith.addf %370, %92 : vector<2x128xf32>
    %372 = arith.negf %371 : vector<2x128xf32>
    %373 = math.exp %372 : vector<2x128xf32>
    %cst_132 = arith.constant 1.000000e+00 : f32
    %374 = vector.broadcast %cst_132 : f32 to vector<2x128xf32>
    %375 = arith.addf %374, %373 : vector<2x128xf32>
    %376 = arith.divf %374, %375 : vector<2x128xf32>
    %377 = math.tanh %371 : vector<2x128xf32>
    %378 = vector.extract_strided_slice %376 {offsets = [0, 0], sizes = [2, 32], strides = [1, 1]} : vector<2x128xf32> to vector<2x32xf32>
    %379 = vector.extract_strided_slice %376 {offsets = [0, 32], sizes = [2, 32], strides = [1, 1]} : vector<2x128xf32> to vector<2x32xf32>
    %380 = vector.extract_strided_slice %377 {offsets = [0, 64], sizes = [2, 32], strides = [1, 1]} : vector<2x128xf32> to vector<2x32xf32>
    %381 = vector.extract_strided_slice %376 {offsets = [0, 96], sizes = [2, 32], strides = [1, 1]} : vector<2x128xf32> to vector<2x32xf32>
    %382 = arith.mulf %379, %340 : vector<2x32xf32>
    %383 = arith.mulf %378, %380 : vector<2x32xf32>
    %384 = arith.addf %382, %383 : vector<2x32xf32>
    %385 = math.tanh %384 : vector<2x32xf32>
    %386 = arith.mulf %381, %385 : vector<2x32xf32>
    %387 = arith.truncf %386 : vector<2x32xf32> to vector<2x32xbf16>
    %cst_133 = arith.constant dense<0.000000e+00> : vector<2x128xf32>
    %388 = tpu.matmul %387, %84, %cst_133 {dimension_numbers = #tpu.dot_dimension_numbers<[1], [0], [0], [1], [0, 0, 1, 1], [], []>} : vector<2x32xbf16>, vector<32x128xbf16>, vector<2x128xf32> -> vector<2x128xf32>
    %389 = arith.truncf %363 : vector<2x32xf32> to vector<2x32xbf16>
    %cst_134 = arith.constant dense<0.000000e+00> : vector<2x128xf32>
    %390 = tpu.matmul %389, %88, %cst_134 {dimension_numbers = #tpu.dot_dimension_numbers<[1], [0], [0], [1], [0, 0, 1, 1], [], []>} : vector<2x32xbf16>, vector<32x128xbf16>, vector<2x128xf32> -> vector<2x128xf32>
    %391 = arith.addf %388, %390 : vector<2x128xf32>
    %392 = arith.addf %391, %96 : vector<2x128xf32>
    %393 = arith.negf %392 : vector<2x128xf32>
    %394 = math.exp %393 : vector<2x128xf32>
    %cst_135 = arith.constant 1.000000e+00 : f32
    %395 = vector.broadcast %cst_135 : f32 to vector<2x128xf32>
    %396 = arith.addf %395, %394 : vector<2x128xf32>
    %397 = arith.divf %395, %396 : vector<2x128xf32>
    %398 = math.tanh %392 : vector<2x128xf32>
    %399 = vector.extract_strided_slice %397 {offsets = [0, 0], sizes = [2, 32], strides = [1, 1]} : vector<2x128xf32> to vector<2x32xf32>
    %400 = vector.extract_strided_slice %397 {offsets = [0, 32], sizes = [2, 32], strides = [1, 1]} : vector<2x128xf32> to vector<2x32xf32>
    %401 = vector.extract_strided_slice %398 {offsets = [0, 64], sizes = [2, 32], strides = [1, 1]} : vector<2x128xf32> to vector<2x32xf32>
    %402 = vector.extract_strided_slice %397 {offsets = [0, 96], sizes = [2, 32], strides = [1, 1]} : vector<2x128xf32> to vector<2x32xf32>
    %403 = arith.mulf %400, %361 : vector<2x32xf32>
    %404 = arith.mulf %399, %401 : vector<2x32xf32>
    %405 = arith.addf %403, %404 : vector<2x32xf32>
    %406 = math.tanh %405 : vector<2x32xf32>
    %407 = arith.mulf %402, %406 : vector<2x32xf32>
    %c12_136 = arith.constant 12 : index
    %c0_137 = arith.constant 0 : index
    %408 = vector.load %arg13[%c12_136, %c0_137] : memref<16x32xf32, #tpu.memory_space<vmem>>, vector<2x32xf32>
    tpu.vector_store %arg13[%c12_136, %c0_137], %407 {strides = array<i32>} : memref<16x32xf32, #tpu.memory_space<vmem>>, vector<2x32xf32>,
    %c14 = arith.constant 14 : index
    %c0_138 = arith.constant 0 : index
    %409 = vector.load %arg12[%c14, %c0_138] : memref<16x32xf32, #tpu.memory_space<vmem>>, vector<2x32xf32>
    %410 = arith.truncf %409 : vector<2x32xf32> to vector<2x32xbf16>
    %cst_139 = arith.constant dense<0.000000e+00> : vector<2x128xf32>
    %411 = tpu.matmul %410, %82, %cst_139 {dimension_numbers = #tpu.dot_dimension_numbers<[1], [0], [0], [1], [0, 0, 1, 1], [], []>} : vector<2x32xbf16>, vector<32x128xbf16>, vector<2x128xf32> -> vector<2x128xf32>
    %412 = arith.truncf %386 : vector<2x32xf32> to vector<2x32xbf16>
    %cst_140 = arith.constant dense<0.000000e+00> : vector<2x128xf32>
    %413 = tpu.matmul %412, %86, %cst_140 {dimension_numbers = #tpu.dot_dimension_numbers<[1], [0], [0], [1], [0, 0, 1, 1], [], []>} : vector<2x32xbf16>, vector<32x128xbf16>, vector<2x128xf32> -> vector<2x128xf32>
    %414 = arith.addf %411, %413 : vector<2x128xf32>
    %415 = arith.addf %414, %92 : vector<2x128xf32>
    %416 = arith.negf %415 : vector<2x128xf32>
    %417 = math.exp %416 : vector<2x128xf32>
    %cst_141 = arith.constant 1.000000e+00 : f32
    %418 = vector.broadcast %cst_141 : f32 to vector<2x128xf32>
    %419 = arith.addf %418, %417 : vector<2x128xf32>
    %420 = arith.divf %418, %419 : vector<2x128xf32>
    %421 = math.tanh %415 : vector<2x128xf32>
    %422 = vector.extract_strided_slice %420 {offsets = [0, 0], sizes = [2, 32], strides = [1, 1]} : vector<2x128xf32> to vector<2x32xf32>
    %423 = vector.extract_strided_slice %420 {offsets = [0, 32], sizes = [2, 32], strides = [1, 1]} : vector<2x128xf32> to vector<2x32xf32>
    %424 = vector.extract_strided_slice %421 {offsets = [0, 64], sizes = [2, 32], strides = [1, 1]} : vector<2x128xf32> to vector<2x32xf32>
    %425 = vector.extract_strided_slice %420 {offsets = [0, 96], sizes = [2, 32], strides = [1, 1]} : vector<2x128xf32> to vector<2x32xf32>
    %426 = arith.mulf %423, %384 : vector<2x32xf32>
    %427 = arith.mulf %422, %424 : vector<2x32xf32>
    %428 = arith.addf %426, %427 : vector<2x32xf32>
    %429 = math.tanh %428 : vector<2x32xf32>
    %430 = arith.mulf %425, %429 : vector<2x32xf32>
    %431 = arith.truncf %430 : vector<2x32xf32> to vector<2x32xbf16>
    %cst_142 = arith.constant dense<0.000000e+00> : vector<2x128xf32>
    %432 = tpu.matmul %431, %84, %cst_142 {dimension_numbers = #tpu.dot_dimension_numbers<[1], [0], [0], [1], [0, 0, 1, 1], [], []>} : vector<2x32xbf16>, vector<32x128xbf16>, vector<2x128xf32> -> vector<2x128xf32>
    %433 = arith.truncf %407 : vector<2x32xf32> to vector<2x32xbf16>
    %cst_143 = arith.constant dense<0.000000e+00> : vector<2x128xf32>
    %434 = tpu.matmul %433, %88, %cst_143 {dimension_numbers = #tpu.dot_dimension_numbers<[1], [0], [0], [1], [0, 0, 1, 1], [], []>} : vector<2x32xbf16>, vector<32x128xbf16>, vector<2x128xf32> -> vector<2x128xf32>
    %435 = arith.addf %432, %434 : vector<2x128xf32>
    %436 = arith.addf %435, %96 : vector<2x128xf32>
    %437 = arith.negf %436 : vector<2x128xf32>
    %438 = math.exp %437 : vector<2x128xf32>
    %cst_144 = arith.constant 1.000000e+00 : f32
    %439 = vector.broadcast %cst_144 : f32 to vector<2x128xf32>
    %440 = arith.addf %439, %438 : vector<2x128xf32>
    %441 = arith.divf %439, %440 : vector<2x128xf32>
    %442 = math.tanh %436 : vector<2x128xf32>
    %443 = vector.extract_strided_slice %441 {offsets = [0, 0], sizes = [2, 32], strides = [1, 1]} : vector<2x128xf32> to vector<2x32xf32>
    %444 = vector.extract_strided_slice %441 {offsets = [0, 32], sizes = [2, 32], strides = [1, 1]} : vector<2x128xf32> to vector<2x32xf32>
    %445 = vector.extract_strided_slice %442 {offsets = [0, 64], sizes = [2, 32], strides = [1, 1]} : vector<2x128xf32> to vector<2x32xf32>
    %446 = vector.extract_strided_slice %441 {offsets = [0, 96], sizes = [2, 32], strides = [1, 1]} : vector<2x128xf32> to vector<2x32xf32>
    %447 = arith.mulf %444, %405 : vector<2x32xf32>
    %448 = arith.mulf %443, %445 : vector<2x32xf32>
    %449 = arith.addf %447, %448 : vector<2x32xf32>
    %450 = math.tanh %449 : vector<2x32xf32>
    %451 = arith.mulf %446, %450 : vector<2x32xf32>
    %c14_145 = arith.constant 14 : index
    %c0_146 = arith.constant 0 : index
    %452 = vector.load %arg13[%c14_145, %c0_146] : memref<16x32xf32, #tpu.memory_space<vmem>>, vector<2x32xf32>
    tpu.vector_store %arg13[%c14_145, %c0_146], %451 {strides = array<i32>} : memref<16x32xf32, #tpu.memory_space<vmem>>, vector<2x32xf32>,
    %c0_147 = arith.constant 0 : index
    %c0_148 = arith.constant 0 : index
    %453 = vector.load %arg13[%c0_147, %c0_148] : memref<16x32xf32, #tpu.memory_space<vmem>>, vector<16x32xf32>
    %454 = arith.truncf %453 : vector<16x32xf32> to vector<16x32xbf16>
    %c0_149 = arith.constant 0 : index
    %c0_150 = arith.constant 0 : index
    %455 = vector.load %arg9[%c0_149, %c0_150] : memref<32x4xbf16, #tpu.memory_space<vmem>>, vector<32x4xbf16>
    %cst_151 = arith.constant dense<0.000000e+00> : vector<16x4xf32>
    %456 = tpu.matmul %454, %455, %cst_151 {dimension_numbers = #tpu.dot_dimension_numbers<[1], [0], [0], [1], [0, 0, 1, 1], [], []>} : vector<16x32xbf16>, vector<32x4xbf16>, vector<16x4xf32> -> vector<16x4xf32>
    %c0_152 = arith.constant 0 : index
    %c0_153 = arith.constant 0 : index
    %457 = vector.load %arg10[%c0_152, %c0_153] : memref<1x4xf32, #tpu.memory_space<vmem>>, vector<1x4xf32>
    %458 = vector.broadcast %457 : vector<1x4xf32> to vector<16x4xf32>
    %459 = arith.addf %456, %458 : vector<16x4xf32>
    %460 = vector.extract_strided_slice %459 {offsets = [0, 0], sizes = [16, 2], strides = [1, 1]} : vector<16x4xf32> to vector<16x2xf32>
    %461 = vector.extract_strided_slice %459 {offsets = [0, 2], sizes = [16, 2], strides = [1, 1]} : vector<16x4xf32> to vector<16x2xf32>
    %462 = arith.negf %461 : vector<16x2xf32>
    %463 = math.exp %462 : vector<16x2xf32>
    %cst_154 = arith.constant 1.000000e+00 : f32
    %464 = vector.broadcast %cst_154 : f32 to vector<16x2xf32>
    %465 = arith.addf %464, %463 : vector<16x2xf32>
    %466 = arith.divf %464, %465 : vector<16x2xf32>
    %467 = arith.mulf %460, %466 : vector<16x2xf32>
    %c0_155 = arith.constant 0 : index
    %c0_156 = arith.constant 0 : index
    %468 = vector.load %arg11[%c0_155, %c0_156] : memref<16x2xf32, #tpu.memory_space<vmem>>, vector<16x2xf32>
    tpu.vector_store %arg11[%c0_155, %c0_156], %467 {strides = array<i32>} : memref<16x2xf32, #tpu.memory_space<vmem>>, vector<16x2xf32>,
    return
  }
}

</mosaic_0001>

<bundles_post_ra>
// kernel: pilstm_forward.1
= control target key start
LH: loop header
LB: loop body
LE: loop exit
PB: predicated region body
PF: predicated region fallthrough
CT: control target
= control target key end

     0   :  { %vm95_vm0 = vcmask 1041408   ;;  %vm79_vm1 = vcmask 31744   ;;  %vm173_vm2 = vcmask 261120   ;;  %s2249_s16 = smov 64   ;;  %s2250_s17 = smov 32   ;;  %s2767_s1 = inlined_call_operand.vmem [shape: bf16[2,4,32], index: 1, kind: input, shape index: {}]   ;;  %s2768_s0 = inlined_call_operand.vmem [shape: bf16[2,80,4], index: 0, kind: input, shape index: {}]   ;;  %s2769_s5 = inlined_call_operand.vmem [shape: f32[6,1,32], index: 5, kind: input, shape index: {}]   ;;  %s2770_s2 = inlined_call_operand.vmem [shape: bf16[2,32,32], index: 2, kind: input, shape index: {}]   ;;  %s2771_s3 = inlined_call_operand.vmem [shape: bf16[2,32,32], index: 3, kind: input, shape index: {}]   ;;  %s2772_s4 = inlined_call_operand.vmem [shape: bf16[32,32], index: 4, kind: input, shape index: {}]   ;;  %s2773_s7 = inlined_call_operand.vmem [shape: bf16[2,32,128], index: 7, kind: input, shape index: {}]   ;;  %s2774_s6 = inlined_call_operand.vmem [shape: bf16[2,32,128], index: 6, kind: input, shape index: {}]   ;;  %s2775_s8 = inlined_call_operand.vmem [shape: f32[2,1,128], index: 8, kind: input, shape index: {}]   ;;  %s2776_s9 = inlined_call_operand.vmem [shape: bf16[32,4], index: 9, kind: input, shape index: {}]   ;;  %s2777_s10 = inlined_call_operand.vmem [shape: f32[1,4], index: 10, kind: input, shape index: {}]   ;;  %s2778_s11 = inlined_call_operand.vmem [shape: f32[16,2], index: 11, kind: output, shape index: {}]  }
   0x1   :  { %v49_v0 = vld [vmem:[%s2767_s1] sm:$0x3]  ;;  %v1893_v1 = vld [vmem:[%s2767_s1 + $0x2] sm:$0x3]  ;;  %v2072_v5 = vld [vmem:[%s2768_s0 + $0x28] sm:$0xff] }
   0x2   :  { %v97_v2 = vsel %vm95_vm0, %v49_v0, 0  ;;  %v250_v3 = vsel %vm95_vm0, %v1893_v1, 0  ;;  %v2065_v4 = vld [vmem:[%s2768_s0] sm:$0xff]  ;;  %v2066_v6 = vld [vmem:[%s2768_s0 + $0x8] sm:$0xff]  ;;  %v2073_v7 = vld [vmem:[%s2768_s0 + $0x30] sm:$0xff] }
   0x3   :  { %106 = vmatpush.bf16.msra.mxu0 %v97_v2  ;;  %259 = vmatpush.bf16.msra.mxu2 %v250_v3  ;;  %v2067_v8 = vld [vmem:[%s2768_s0 + $0x10] sm:$0xff]  ;;  %v2074_v9 = vld [vmem:[%s2768_s0 + $0x38] sm:$0xff]  ;;  %v2075_v11 = vld [vmem:[%s2768_s0 + $0x40] sm:$0xff] }
   0x4   :  { %v2068_v10 = vld [vmem:[%s2768_s0 + $0x18] sm:$0xff]  ;;  %v2069_v12 = vld [vmem:[%s2768_s0 + $0x20] sm:$0xff]  ;;  %v2076_v13 = vld [vmem:[%s2768_s0 + $0x48] sm:$0xff] }
   0x5   :  { %v2071_v25 = vld [vmem:[%s2770_s2 + $0x8] sm:$0xff]  ;;  %v2070_v26 = vld [vmem:[%s2770_s2] sm:$0xff]  ;;  %v2078_v28 = vld [vmem:[%s2770_s2 + $0x18] sm:$0xff] }
   0x6   :  { %1868 = vmatmul.msk.bf16.vlgmr.msra.gmra.mxu0 %vm79_vm1, %v2065_v4  ;;  %1915 = vmatmul.msk.bf16.vlgmr.msra.gmra.mxu2 %vm79_vm1, %v2072_v5  ;;  %v2077_v30 = vld [vmem:[%s2770_s2 + $0x10] sm:$0xff]  ;;  %v2099_v33 = vld [vmem:[%s2769_s5] ss:$0 sm:$0xff]  ;;  %v2100_v42 = vld [vmem:[%s2769_s5 + $0x1] ss:$0 sm:$0xff] }
   0x7   :  { %183 = vmatpush.bf16.msra.mxu1 %v2071_v25  ;;  %336 = vmatpush.bf16.msra.mxu3 %v2078_v28 }
   0xb   :  { %184 = vmatpush.bf16.msra.mxu1 %v2070_v26  ;;  %337 = vmatpush.bf16.msra.mxu3 %v2077_v30 }
  0x16   :  { %1869 = vmatmul.msk.bf16.gmra.mxu0 %vm79_vm1, %v2066_v6  ;;  %1916 = vmatmul.msk.bf16.gmra.mxu2 %vm79_vm1, %v2073_v7 }
  0x26   :  { %1870 = vmatmul.msk.bf16.gmra.mxu0 %vm79_vm1, %v2067_v8  ;;  %1917 = vmatmul.msk.bf16.gmra.mxu2 %vm79_vm1, %v2074_v9 }
  0x36   :  { %1871 = vmatmul.msk.bf16.gmra.mxu0 %vm79_vm1, %v2068_v10  ;;  %1918 = vmatmul.msk.bf16.gmra.mxu2 %vm79_vm1, %v2075_v11 }
  0x46   :  { %1872 = vmatmul.msk.bf16.gmra.mxu0 %vm79_vm1, %v2069_v12  ;;  %1919 = vmatmul.msk.bf16.gmra.mxu2 %vm79_vm1, %v2076_v13 }
  0x83   :  { %v108_v14 = vpop.f32.mrf.mxu0 }
  0x84   :  { %v109_v37 = vadd.f32 %v2099_v33, %v108_v14 }
  0x86   :  { %v133_v45 = vmax.f32 %v109_v37, 0.0  ;;  %v2081_v37 = vld [vmem:[%s2771_s3 + $0x10] sm:$0xff] }
  0x89   :  { %v261_v15 = vpop.f32.mrf.mxu2 }
  0x8a   :  { %v262_v53 = vadd.f32 %v2100_v42, %v261_v15 }
  0x8b   :  { %v110_v16 = vpop.f32.mrf.mxu0 }
  0x8c   :  { %v111_v38 = vadd.f32 %v2099_v33, %v110_v16  ;;  %v286_v8 = vmax.f32 %v262_v53, 0.0  ;;  %v2086_v53 = vld [vmem:[%s2774_s6 + $0x8] sm:$0xff] }
  0x8d   :  { %713 = vmatpush.bf16.msrb.mxu0 %v2086_v53 }
  0x8e   :  { %v134_v46 = vmax.f32 %v111_v38, 0.0 }
  0x91   :  { %v263_v17 = vpop.f32.mrf.mxu2 }
  0x92   :  { %v264_v54 = vadd.f32 %v2100_v42, %v263_v17 }
  0x93   :  { %v113_v18 = vpop.f32.mrf.mxu0 }
  0x94   :  { %v114_v34 = vadd.f32 %v2099_v33, %v113_v18  ;;  %v287_v9 = vmax.f32 %v264_v54, 0.0  ;;  %v2416_v54 = vld [vmem:[%s2773_s7] sm:$0xff] }
  0x96   :  { %v135_v43 = vmax.f32 %v114_v34, 0.0  ;;  %v2080_v34 = vld [vmem:[%s2771_s3 + $0x8] sm:$0xff] }
  0x97   :  { %405 = vmatpush.bf16.msrb.mxu3 %v2080_v34 }
  0x98   :  { %v143_v56 = vadd.f32 %v135_v43, %v133_v45  ;;  %v2102_v45 = vld [vmem:[%s2769_s5 + $0x3] ss:$0 sm:$0xff] }
  0x99   :  { %v266_v19 = vpop.f32.mrf.mxu2 }
  0x9a   :  { %v267_v49 = vadd.f32 %v2100_v42, %v266_v19 }
  0x9b   :  { %v115_v20 = vpop.f32.mrf.mxu0 }
  0x9c   :  { %v116_v35 = vadd.f32 %v2099_v33, %v115_v20  ;;  %v288_v63 = vmax.f32 %v267_v49, 0.0 }
  0x9e   :  { %v136_v44 = vmax.f32 %v116_v35, 0.0  ;;  %v296_v16 = vadd.f32 %v288_v63, %v286_v8  ;;  %v2079_v35 = vld [vmem:[%s2771_s3] sm:$0xff] }
  0x9f   :  { %406 = vmatpush.bf16.msrb.mxu3 %v2079_v35 }
  0xa0   :  { %v144_v57 = vadd.f32 %v136_v44, %v134_v46 }
  0xa1   :  { %v268_v21 = vpop.f32.mrf.mxu2 }
  0xa2   :  { %v269_v50 = vadd.f32 %v2100_v42, %v268_v21 }
  0xa3   :  { %v118_v22 = vpop.f32.mrf.mxu0 }
  0xa4   :  { %v119_v39 = vadd.f32 %v2099_v33, %v118_v22  ;;  %v289_v0 = vmax.f32 %v269_v50, 0.0  ;;  %v2084_v50 = vld [vmem:[%s2772_s4 + $0x8] sm:$0xff] }
  0xa6   :  { %v137_v51 = vmax.f32 %v119_v39, 0.0  ;;  %v297_v17 = vadd.f32 %v289_v0, %v287_v9  ;;  %v2101_v39 = vld [vmem:[%s2769_s5 + $0x2] ss:$0 sm:$0xff] }
  0xa8   :  { %v145_v1 = vadd.f32 %v143_v56, %v137_v51  ;;  %v2083_v51 = vld [vmem:[%s2772_s4] sm:$0xff] }
  0xa9   :  { %v271_v23 = vpop.f32.mrf.mxu2 }
  0xaa   :  { %v272_v58 = vadd.f32 %v2100_v42, %v271_v23 }
  0xab   :  { %v120_v24 = vpop.f32.mrf.mxu0 }
  0xac   :  { %v121_v40 = vadd.f32 %v2099_v33, %v120_v24  ;;  %v290_v10 = vmax.f32 %v272_v58, 0.0  ;;  %v2103_v58 = vld [vmem:[%s2769_s5 + $0x4] ss:$0 sm:$0xff] }
  0xae   :  { %v138_v52 = vmax.f32 %v121_v40, 0.0  ;;  %v298_v22 = vadd.f32 %v296_v16, %v290_v10 }
  0xb0   :  { %v146_v2 = vadd.f32 %v144_v57, %v138_v52  ;;  %v2407_v52 = vld [vmem:[%s2773_s7 + $0x8] sm:$0xff] }
  0xb1   :  { %v273_v27 = vpop.f32.mrf.mxu2 }
  0xb2   :  { %v274_v59 = vadd.f32 %v2100_v42, %v273_v27 }
  0xb3   :  { %v123_v29 = vpop.f32.mrf.mxu0 }
  0xb4   :  { %v124_v47 = vadd.f32 %v2099_v33, %v123_v29  ;;  %v291_v11 = vmax.f32 %v274_v59, 0.0 }
  0xb6   :  { %v139_v61 = vmax.f32 %v124_v47, 0.0  ;;  %v299_v24 = vadd.f32 %v297_v17, %v291_v11 }
  0xb8   :  { %v147_v12 = vadd.f32 %v145_v1, %v139_v61 }
  0xb9   :  { %v276_v31 = vpop.f32.mrf.mxu2 }
  0xba   :  { %v277_v4 = vadd.f32 %v2100_v42, %v276_v31 }
  0xbb   :  { %v125_v32 = vpop.f32.mrf.mxu0 }
  0xbc   :  { %v126_v48 = vadd.f32 %v2099_v33, %v125_v32  ;;  %v292_v18 = vmax.f32 %v277_v4, 0.0  ;;  %v2085_v4 = vld [vmem:[%s2774_s6] sm:$0xff] }
  0xbd   :  { %714 = vmatpush.bf16.msrb.mxu0 %v2085_v4 }
  0xbe   :  { %v140_v62 = vmax.f32 %v126_v48, 0.0  ;;  %v300_v28 = vadd.f32 %v298_v22, %v292_v18 }
  0xc0   :  { %v148_v13 = vadd.f32 %v146_v2, %v140_v62 }
  0xc1   :  { %v278_v36 = vpop.f32.mrf.mxu2  ;;  %865 = vmatpush.bf16.msra.mxu0 %v2086_v53 }
  0xc2   :  { %v279_v5 = vadd.f32 %v2100_v42, %v278_v36  ;;  %v2082_v36 = vld [vmem:[%s2771_s3 + $0x18] sm:$0xff] }
  0xc3   :  { %v128_v41 = vpop.f32.mrf.mxu0  ;;  %376 = vmatpush.bf16.msrb.mxu1 %v2082_v36 }
  0xc4   :  { %v129_v55 = vadd.f32 %v2099_v33, %v128_v41  ;;  %v293_v19 = vmax.f32 %v279_v5, 0.0  ;;  %v2104_v5 = vld [vmem:[%s2769_s5 + $0x5] ss:$0 sm:$0xff] }
  0xc5   :  { %866 = vmatpush.bf16.msra.mxu0 %v2085_v4 }
  0xc6   :  { %v141_v6 = vmax.f32 %v129_v55, 0.0  ;;  %v301_v29 = vadd.f32 %v299_v24, %v293_v19 }
  0xc7   :  { %377 = vmatpush.bf16.msrb.mxu1 %v2081_v37 }
  0xc8   :  { %v149_v20 = vadd.f32 %v147_v12, %v141_v6 }
  0xc9   :  { %v281_v60 = vpop.f32.mrf.mxu2 }
  0xca   :  { %v282_v14 = vadd.f32 %v2100_v42, %v281_v60 }
  0xcb   :  { %v130_v3 = vpop.f32.mrf.mxu0 }
  0xcc   :  { %v131_v7 = vadd.f32 %v2099_v33, %v130_v3  ;;  %v294_v25 = vmax.f32 %v282_v14, 0.0  ;;  %v2248_v3 = vmov 0  }
  0xce   :  { %v142_v15 = vmax.f32 %v131_v7, 0.0  ;;  %v302_v31 = vadd.f32 %v300_v28, %v294_v25 }
  0xd0   :  { %v150_v21 = vadd.f32 %v148_v13, %v142_v15 }
  0xd1   :  { %v283_v23 = vpop.f32.mrf.mxu2 }
  0xd2   :  { %v284_v26 = vadd.f32 %v2100_v42, %v283_v23  ;;  %v151_v27 = vpack.c.bf16 %v150_v21, %v149_v20 }
  0xd4   :  { %v295_v30 = vmax.f32 %v284_v26, 0.0  ;;  %1882 = vmatmul.msk.bf16.vlgmr.msra.gmra.mxu1 %vm173_vm2, %v151_v27 }
  0xd5   :  { %453 = vmatpush.bf16.msra.mxu1 %v2084_v50 }
  0xd6   :  { %v303_v32 = vadd.f32 %v301_v29, %v295_v30  ;;  %v2443_v30 = vld [vmem:[%s2775_s8] ss:$0 sm:$0xff] }
  0xd8   :  { %v304_v33 = vpack.c.bf16 %v303_v32, %v302_v31 }
  0xd9   :  { %454 = vmatpush.bf16.msra.mxu1 %v2083_v51 }
  0xda   :  { %1933 = vmatmul.msk.bf16.vlgmr.msra.gmra.mxu3 %vm173_vm2, %v304_v33 }
  0xdb   :  { %515 = vmatpush.bf16.msra.mxu3 %v2407_v52 }
  0xdf   :  { %516 = vmatpush.bf16.msra.mxu3 %v2416_v54 }
 0x151   :  { %v186_v38 = vpop.f32.mrf.mxu1 }
 0x152   :  { %v187_v41 = vadd.f32 %v2101_v39, %v186_v38 }
 0x159   :  { %v188_v40 = vpop.f32.mrf.mxu1 }
 0x15a   :  { %v189_v42 = vadd.f32 %v2101_v39, %v188_v40 }
 0x15c   :  { %v344_v43 = vpack.c.bf16 %v189_v42, %v187_v41 }
 0x15d   :  { %v339_v44 = vpop.f32.mrf.mxu3 }
 0x15e   :  { %1955 = vmatmul.msk.bf16.vlgmr.msrb.gmra.mxu3 %vm173_vm2, %v344_v43  ;;  %v340_v47 = vadd.f32 %v2102_v45, %v339_v44 }
 0x165   :  { %v341_v46 = vpop.f32.mrf.mxu3 }
 0x166   :  { %v342_v48 = vadd.f32 %v2102_v45, %v341_v46 }
 0x168   :  { %v349_v49 = vpack.c.bf16 %v342_v48, %v340_v47 }
 0x16a   :  { %1946 = vmatmul.msk.bf16.vlgmr.msrb.gmra.mxu1 %vm173_vm2, %v349_v49 }
 0x16b   :  { %543 = vmatpush.bf16.msrb.mxu1 %v2086_v53 }
 0x16e   :  { %517 = vmatmul.bf16.vlgmr.msra.gmra.mxu3 %v2248_v3 }
 0x16f   :  { %544 = vmatpush.bf16.msrb.mxu1 %v2085_v4 }
 0x1e1   :  { %v408_v55 = vpop.f32.mrf.mxu3 }
 0x1e7   :  { %v379_v56 = vpop.f32.mrf.mxu1 }
 0x1e8   :  { %v409_v57 = vadd.f32 %v408_v55, %v379_v56 }
 0x1e9   :  { %v410_v59 = vpop.f32.mrf.mxu3 }
 0x1ea   :  { %v418_v61 = vadd.f32 %v2103_v58, %v409_v57 }
 0x1ec   :  { %v420_v0 = vmax.f32 %v418_v61, 0.0 }
 0x1ef   :  { %v381_v60 = vpop.f32.mrf.mxu1 }
 0x1f0   :  { %v411_v62 = vadd.f32 %v410_v59, %v381_v60 }
 0x1f1   :  { %v518_v26 = vpop.f32.mrf.mxu3 }
 0x1f2   :  { %v419_v63 = vadd.f32 %v2103_v58, %v411_v62 }
 0x1f4   :  { %v421_v1 = vmax.f32 %v419_v63, 0.0 }
 0x1f6   :  { %v422_v2 = vpack.c.bf16 %v421_v1, %v420_v0 }
 0x1f8   :  { %1966 = vmatmul.msk.bf16.vlgmr.msra.gmra.mxu1 %vm173_vm2, %v422_v2 }
 0x1f9   :  { %v520_v28 = vpop.f32.mrf.mxu3 }
 0x275   :  { %v456_v6 = vpop.f32.mrf.mxu1 }
 0x276   :  { %v457_v7 = vadd.f32 %v2104_v5, %v456_v6 }
 0x278   :  { %v461_v8 = vmax.f32 %v457_v7, 0.0 }
 0x27a   :  { %463 = vst.msk [vmem:[#allocation2] sm:$0xff] %vm173_vm2, %v461_v8  ;;  %v2469_v8 = vld [vmem:[%s2773_s7 + $0x18] sm:$0xff] }
 0x27b   :  { %607 = vmatpush.bf16.msrb.mxu3 %v2469_v8  ;;  %772 = vmatpush.bf16.msrb.mxu2 %v2469_v8 }
 0x27d   :  { %v458_v9 = vpop.f32.mrf.mxu1 }
 0x27e   :  { %v459_v10 = vadd.f32 %v2104_v5, %v458_v9  ;;  %v2474_v9 = vld [vmem:[%s2774_s6 + $0x18] sm:$0xff] }
 0x27f   :  { %638 = vmatpush.bf16.msra.mxu1 %v2474_v9 }
 0x280   :  { %v462_v11 = vmax.f32 %v459_v10, 0.0  ;;  %v2480_v10 = vld [vmem:[%s2773_s7 + $0x10] sm:$0xff] }
 0x281   :  { %v492_v12 = vld [vmem:[#allocation2] sm:$0x3]  ;;  %v689_v13 = vld [vmem:[#allocation2 + $0x2] sm:$0x3]  ;;  %v841_v16 = vld [vmem:[#allocation2 + $0x4] sm:$0x3]  ;;  %608 = vmatpush.bf16.msrb.mxu3 %v2480_v10  ;;  %773 = vmatpush.bf16.msrb.mxu2 %v2480_v10 }
 0x282   :  { %464 = vst.msk [vmem:[#allocation2 + $0x8] sm:$0xff] %vm173_vm2, %v462_v11  ;;  %v493_v14 = vpack.c.bf16 %v492_v12, %v492_v12  ;;  %v690_v15 = vpack.c.bf16 %v689_v13, %v689_v13  ;;  %v842_v17 = vpack.c.bf16 %v841_v16, %v841_v16  ;;  %v993_v18 = vld [vmem:[#allocation2 + $0x6] sm:$0x3]  ;;  %v2486_v11 = vld [vmem:[%s2774_s6 + $0x10] sm:$0xff] }
 0x283   :  { %v994_v19 = vpack.c.bf16 %v993_v18, %v993_v18  ;;  %639 = vmatpush.bf16.msra.mxu1 %v2486_v11 }
 0x284   :  { %1992 = vmatmul.msk.bf16.vlgmr.msrb.gmra.mxu1 %vm173_vm2, %v493_v14  ;;  %2013 = vmatmul.msk.bf16.vlgmr.msrb.gmra.mxu0 %vm173_vm2, %v690_v15 }
 0x285   :  { %1017 = vmatpush.bf16.msrb.mxu0 %v2086_v53  ;;  %697 = vmatpush.bf16.msra.mxu3 %v2407_v52 }
 0x286   :  { %924 = vmatpush.bf16.msra.mxu2 %v2469_v8  ;;  %609 = vmatmul.bf16.vlgmr.msrb.gmra.mxu3 %v2248_v3 }
 0x287   :  { %791 = vmatpush.bf16.msrb.mxu1 %v2474_v9 }
 0x289   :  { %1018 = vmatpush.bf16.msrb.mxu0 %v2085_v4  ;;  %v1145_v20 = vld [vmem:[#allocation2 + $0x8] sm:$0x3]  ;;  %v1297_v22 = vld [vmem:[#allocation2 + $0xa] sm:$0x3]  ;;  %v1449_v24 = vld [vmem:[#allocation2 + $0xc] sm:$0x3]  ;;  %698 = vmatpush.bf16.msra.mxu3 %v2416_v54 }
 0x28a   :  { %v1146_v21 = vpack.c.bf16 %v1145_v20, %v1145_v20  ;;  %v1298_v23 = vpack.c.bf16 %v1297_v22, %v1297_v22  ;;  %v1450_v25 = vpack.c.bf16 %v1449_v24, %v1449_v24  ;;  %v1601_v27 = vld [vmem:[#allocation2 + $0xe] sm:$0x3]  ;;  %925 = vmatpush.bf16.msra.mxu2 %v2480_v10 }
 0x28b   :  { %v1602_v29 = vpack.c.bf16 %v1601_v27, %v1601_v27  ;;  %792 = vmatpush.bf16.msrb.mxu1 %v2486_v11 }
 0x28d   :  { %849 = vmatpush.bf16.msrb.mxu3 %v2407_v52 }
 0x291   :  { %850 = vmatpush.bf16.msrb.mxu3 %v2416_v54 }
 0x294   :  { %2019 = vmatmul.msk.bf16.vlgmr.msra.gmra.mxu0 %vm173_vm2, %v842_v17  ;;  %v2511_v17 = vld [vmem:[%s2775_s8 + $0x1] ss:$0 sm:$0xff] }
 0x295   :  { %1169 = vmatpush.bf16.msra.mxu0 %v2086_v53 }
 0x299   :  { %1170 = vmatpush.bf16.msra.mxu0 %v2085_v4 }
 0x2a4   :  { %2025 = vmatmul.msk.bf16.vlgmr.msrb.gmra.mxu0 %vm173_vm2, %v994_v19 }
 0x2a5   :  { %1321 = vmatpush.bf16.msrb.mxu0 %v2086_v53 }
 0x2a9   :  { %1322 = vmatpush.bf16.msrb.mxu0 %v2085_v4 }
 0x2b4   :  { %2031 = vmatmul.msk.bf16.vlgmr.msra.gmra.mxu0 %vm173_vm2, %v1146_v21 }
 0x2b5   :  { %1473 = vmatpush.bf16.msra.mxu0 %v2086_v53 }
 0x2b9   :  { %1474 = vmatpush.bf16.msra.mxu0 %v2085_v4 }
 0x2c4   :  { %2037 = vmatmul.msk.bf16.vlgmr.msrb.gmra.mxu0 %vm173_vm2, %v1298_v23 }
 0x2c5   :  { %1625 = vmatpush.bf16.msrb.mxu0 %v2086_v53 }
 0x2c9   :  { %1626 = vmatpush.bf16.msrb.mxu0 %v2085_v4 }
 0x2d4   :  { %2043 = vmatmul.msk.bf16.vlgmr.msra.gmra.mxu0 %vm173_vm2, %v1450_v25 }
 0x2e4   :  { %2049 = vmatmul.msk.bf16.vlgmr.msrb.gmra.mxu0 %vm173_vm2, %v1602_v29 }
 0x301   :  { %v546_v31 = vpop.f32.mrf.mxu1  ;;  %v2445_v32 = vpop.f32.mrf.mxu0 }
 0x302   :  { %v547_v33 = vadd.f32 %v546_v31, %v518_v26 }
 0x304   :  { %v550_v34 = vadd.f32 %v2443_v30, %v547_v33 }
 0x306   :  { %2108 = vtanh.f32 %v550_v34  ;;  %v1993_v47 = vmul.f32 -1.442695, %v550_v34 }
 0x308   :  { %2110 = vpow2.f32 %v1993_v47 }
 0x309   :  { %v548_v35 = vpop.f32.mrf.mxu1  ;;  %v718_v36 = vpop.f32.mrf.mxu0 }
 0x30a   :  { %v610_v15 = vpop.f32.mrf.mxu3 }
 0x30c   :  { %v2109_v37 = vpop.eup %2108 }
 0x30d   :  { %573 = vrot.lane.b32.xlu0 %v2109_v37, %s2249_s16 }
 0x30e   :  { %v2111_v49 = vpop.eup %2110 }
 0x30f   :  { %v554_v50 = vadd.f32 1.0, %v2111_v49 }
 0x311   :  { %v2449_v38 = vpop.f32.mrf.mxu0  ;;  %2112 = vrcp.f32 %v554_v50  ;;  %v566_v60 = vand.u32 2147483648, %v554_v50  ;;  %vm560_vm4 = vweird.f32 %v554_v50  ;;  %v564_v61 = vand.u32 2147483647, %v554_v50 }
 0x312   :  { %v612_v3 = vpop.f32.mrf.mxu3 }
 0x313   :  { %v567_v63 = vor.u32 1.1754944e-38, %v566_v60  ;;  %vm565_vm6 = vcmp.eq.f32.partialorder %v564_v61, 8.507059e+37 }
 0x317   :  { %v2113_v53 = vpop.eup %2112 }
 0x318   :  { %v556_v56 = vmul.f32 %v2113_v53, %v554_v50  ;;  %vm561_vm3 = vweird.f32 %v2113_v53 }
 0x319   :  { %v870_v39 = vpop.f32.mrf.mxu0  ;;  %vm562_vm5 = vmor %vm560_vm4, %vm561_vm3 }
 0x31a   :  { %v557_v57 = vsub.f32 1.0, %v556_v56 }
 0x31c   :  { %v558_v58 = vmul.f32 %v2113_v53, %v557_v57 }
 0x31e   :  { %v559_v59 = vadd.f32 %v2113_v53, %v558_v58 }
 0x320   :  { %v563_v62 = vsel %vm562_vm5, %v2113_v53, %v559_v59 }
 0x321   :  { %v2451_v40 = vpop.f32.mrf.mxu0  ;;  %v568_v1 = vsel %vm565_vm6, %v567_v63, %v563_v62 }
 0x322   :  { %v571_v4 = vmul.f32 0.0, %v568_v1 }
 0x329   :  { %v1022_v41 = vpop.f32.mrf.mxu0 }
 0x331   :  { %v2453_v42 = vpop.f32.mrf.mxu0 }
 0x339   :  { %v1174_v43 = vpop.f32.mrf.mxu0 }
 0x341   :  { %v2455_v44 = vpop.f32.mrf.mxu0 }
 0x349   :  { %v1326_v45 = vpop.f32.mrf.mxu0 }
 0x351   :  { %v2457_v46 = vpop.f32.mrf.mxu0 }
 0x359   :  { %v1478_v48 = vpop.f32.mrf.mxu0 }
 0x361   :  { %v2459_v51 = vpop.f32.mrf.mxu0 }
 0x369   :  { %v1630_v55 = vpop.f32.mrf.mxu0 }
 0x37f   :  { %v574_v0 = vpop.permute.xlu0 %573 }
 0x380   :  { %v576_v2 = vmul.f32 %v574_v0, %v568_v1 }
 0x382   :  { %578 = vrot.lane.b32.xlu0 %v576_v2, %s2250_s17 }
 0x3f4   :  { %v579_v5 = vpop.permute.xlu0 %578 }
 0x3f5   :  { %v2462_v6 = vadd.f32 %v579_v5, %v571_v4 }
 0x3f7   :  { %2114 = vtanh.f32 %v2462_v6 }
 0x3fd   :  { %v2115_v7 = vpop.eup %2114 }
 0x3fe   :  { %584 = vrot.lane.b32.xlu1 %v2115_v7, %s2249_s16 }
 0x470   :  { %v585_v12 = vpop.permute.xlu1 %584 }
 0x471   :  { %v587_v13 = vmul.f32 %v585_v12, %v568_v1 }
 0x473   :  { %v588_v14 = vpack.c.bf16 %v587_v13, %v587_v13 }
 0x475   :  { %615 = vrot.lane.b32.xlu1 %v588_v14, %s2250_s17 }
 0x4e7   :  { %v616_v16 = vpop.permute.xlu1 %615 }
 0x4e8   :  { %2010 = vmatmul.msk.bf16.vlgmr.msra.gmra.mxu1 %vm173_vm2, %v616_v16  ;;  %2012 = vmatmul.msk.bf16.vlgmr.msra.gmra.mxu3 %vm173_vm2, %v616_v16 }
 0x4e9   :  { %1001 = vmatpush.bf16.msra.mxu3 %v2407_v52  ;;  %943 = vmatpush.bf16.msra.mxu1 %v2474_v9 }
 0x4ed   :  { %1002 = vmatpush.bf16.msra.mxu3 %v2416_v54  ;;  %944 = vmatpush.bf16.msra.mxu1 %v2486_v11 }
 0x565   :  { %v641_v18 = vpop.f32.mrf.mxu1 }
 0x566   :  { %v642_v19 = vadd.f32 %v641_v18, %v610_v15 }
 0x568   :  { %v645_v20 = vadd.f32 %v2511_v17, %v642_v19 }
 0x56a   :  { %2116 = vtanh.f32 %v645_v20  ;;  %v2011_v28 = vmul.f32 -1.442695, %v645_v20 }
 0x56b   :  { %v700_v21 = vpop.f32.mrf.mxu3 }
 0x56c   :  { %v717_v22 = vadd.f32 %v2445_v32, %v700_v21 }
 0x56d   :  { %v643_v23 = vpop.f32.mrf.mxu1 }
 0x56e   :  { %v720_v24 = vadd.f32 %v2443_v30, %v717_v22 }
 0x570   :  { %v2117_v25 = vpop.eup %2116  ;;  %2118 = vtanh.f32 %v720_v24  ;;  %v2014_v29 = vmul.f32 -1.442695, %v720_v24 }
 0x571   :  { %668 = vrot.lane.b32.xlu2 %v2117_v25, %s2249_s16  ;;  %2120 = vpow2.f32 %v2011_v28 }
 0x572   :  { %2122 = vpow2.f32 %v2014_v29 }
 0x573   :  { %v702_v26 = vpop.f32.mrf.mxu3 }
 0x576   :  { %v2119_v27 = vpop.eup %2118 }
 0x577   :  { %v2121_v31 = vpop.eup %2120 }
 0x578   :  { %v649_v33 = vadd.f32 1.0, %v2121_v31  ;;  %v2123_v34 = vpop.eup %2122 }
 0x579   :  { %743 = vrot.lane.b32.xlu2 %v2119_v27, %s2249_s16  ;;  %v724_v32 = vadd.f32 1.0, %v2123_v34 }
 0x57a   :  { %2124 = vrcp.f32 %v649_v33  ;;  %v661_v48 = vand.u32 2147483648, %v649_v33  ;;  %vm655_vm8 = vweird.f32 %v649_v33  ;;  %v659_v49 = vand.u32 2147483647, %v649_v33 }
 0x57b   :  { %2126 = vrcp.f32 %v724_v32  ;;  %v736_v60 = vand.u32 2147483648, %v724_v32  ;;  %vm730_vm12 = vweird.f32 %v724_v32  ;;  %v734_v61 = vand.u32 2147483647, %v724_v32 }
 0x57c   :  { %v662_v55 = vor.u32 1.1754944e-38, %v661_v48  ;;  %vm660_vm10 = vcmp.eq.f32.partialorder %v659_v49, 8.507059e+37 }
 0x57d   :  { %v737_v63 = vor.u32 1.1754944e-38, %v736_v60  ;;  %vm735_vm14 = vcmp.eq.f32.partialorder %v734_v61, 8.507059e+37 }
 0x580   :  { %v2125_v35 = vpop.eup %2124 }
 0x581   :  { %v651_v36 = vmul.f32 %v2125_v35, %v649_v33  ;;  %v2127_v39 = vpop.eup %2126  ;;  %vm656_vm7 = vweird.f32 %v2125_v35 }
 0x582   :  { %v726_v43 = vmul.f32 %v2127_v39, %v724_v32  ;;  %vm657_vm9 = vmor %vm655_vm8, %vm656_vm7  ;;  %vm731_vm11 = vweird.f32 %v2127_v39 }
 0x583   :  { %v652_v37 = vsub.f32 1.0, %v651_v36  ;;  %vm732_vm13 = vmor %vm730_vm12, %vm731_vm11 }
 0x584   :  { %v727_v47 = vsub.f32 1.0, %v726_v43 }
 0x585   :  { %v653_v41 = vmul.f32 %v2125_v35, %v652_v37 }
 0x586   :  { %v728_v53 = vmul.f32 %v2127_v39, %v727_v47 }
 0x587   :  { %v654_v45 = vadd.f32 %v2125_v35, %v653_v41 }
 0x588   :  { %v729_v59 = vadd.f32 %v2127_v39, %v728_v53 }
 0x589   :  { %v658_v50 = vsel %vm657_vm9, %v2125_v35, %v654_v45 }
 0x58a   :  { %v663_v57 = vsel %vm660_vm10, %v662_v55, %v658_v50  ;;  %v733_v62 = vsel %vm732_vm13, %v2127_v39, %v729_v59 }
 0x58b   :  { %v738_v0 = vsel %vm735_vm14, %v737_v63, %v733_v62  ;;  %v666_v4 = vmul.f32 0.0, %v663_v57 }
 0x58c   :  { %v741_v12 = vmul.f32 %v738_v0, %v2462_v6 }
 0x5cb   :  { %v669_v56 = vpop.permute.xlu2 %668 }
 0x5cc   :  { %v671_v58 = vmul.f32 %v669_v56, %v663_v57 }
 0x5ce   :  { %673 = vrot.lane.b32.xlu0 %v671_v58, %s2250_s17 }
 0x5d3   :  { %v744_v1 = vpop.permute.xlu2 %743 }
 0x5d4   :  { %v746_v2 = vmul.f32 %v744_v1, %v738_v0 }
 0x5d6   :  { %748 = vrot.lane.b32.xlu1 %v746_v2, %s2250_s17 }
 0x640   :  { %v674_v5 = vpop.permute.xlu0 %673 }
 0x641   :  { %v2520_v7 = vadd.f32 %v674_v5, %v666_v4 }
 0x643   :  { %2128 = vtanh.f32 %v2520_v7 }
 0x648   :  { %v749_v13 = vpop.permute.xlu1 %748 }
 0x649   :  { %v2129_v14 = vpop.eup %2128  ;;  %v2524_v15 = vadd.f32 %v749_v13, %v741_v12 }
 0x64a   :  { %679 = vrot.lane.b32.xlu2 %v2129_v14, %s2249_s16 }
 0x64b   :  { %2130 = vtanh.f32 %v2524_v15 }
 0x651   :  { %v2131_v16 = vpop.eup %2130 }
 0x652   :  { %754 = vrot.lane.b32.xlu0 %v2131_v16, %s2249_s16 }
 0x6a4   :  { %v680_v3 = vpop.permute.xlu2 %679 }
 0x6a5   :  { %v2529_v18 = vmul.f32 %v680_v3, %v663_v57 }
 0x6a7   :  { %v759_v19 = vpack.c.bf16 %v2529_v18, %v2529_v18 }
 0x6a9   :  { %761 = vrot.lane.b32.xlu1 %v759_v19, %s2250_s17 }
 0x6c4   :  { %v755_v6 = vpop.permute.xlu0 %754 }
 0x6c5   :  { %v757_v20 = vmul.f32 %v755_v6, %v738_v0 }
 0x6c7   :  { %v758_v21 = vpack.c.bf16 %v757_v20, %v757_v20 }
 0x6c9   :  { %780 = vrot.lane.b32.xlu2 %v758_v21, %s2250_s17 }
 0x71b   :  { %v762_v22 = vpop.permute.xlu1 %761 }
 0x71c   :  { %2015 = vmatmul.msk.bf16.vlgmr.msrb.gmra.mxu2 %vm173_vm2, %v762_v22 }
 0x71d   :  { %1076 = vmatpush.bf16.msrb.mxu2 %v2469_v8 }
 0x721   :  { %1077 = vmatpush.bf16.msrb.mxu2 %v2480_v10 }
 0x723   :  { %v781_v23 = vpop.permute.xlu2 %780 }
 0x724   :  { %2016 = vmatmul.msk.bf16.vlgmr.msrb.gmra.mxu1 %vm173_vm2, %v781_v23  ;;  %2018 = vmatmul.msk.bf16.vlgmr.msrb.gmra.mxu3 %vm173_vm2, %v781_v23 }
 0x725   :  { %1095 = vmatpush.bf16.msrb.mxu1 %v2474_v9  ;;  %1153 = vmatpush.bf16.msrb.mxu3 %v2407_v52 }
 0x729   :  { %1096 = vmatpush.bf16.msrb.mxu1 %v2486_v11  ;;  %1154 = vmatpush.bf16.msrb.mxu3 %v2416_v54 }
 0x79f   :  { %v775_v24 = vpop.f32.mrf.mxu2 }
 0x7a1   :  { %v794_v25 = vpop.f32.mrf.mxu1 }
 0x7a2   :  { %v795_v26 = vadd.f32 %v794_v25, %v775_v24 }
 0x7a4   :  { %v798_v27 = vadd.f32 %v2511_v17, %v795_v26 }
 0x7a6   :  { %2132 = vtanh.f32 %v798_v27  ;;  %v2017_v37 = vmul.f32 -1.442695, %v798_v27 }
 0x7a7   :  { %v777_v28 = vpop.f32.mrf.mxu2  ;;  %v852_v29 = vpop.f32.mrf.mxu3 }
 0x7a8   :  { %v869_v31 = vadd.f32 %v2449_v38, %v852_v29 }
 0x7a9   :  { %v796_v33 = vpop.f32.mrf.mxu1 }
 0x7aa   :  { %v872_v34 = vadd.f32 %v2443_v30, %v869_v31 }
 0x7ac   :  { %v2133_v32 = vpop.eup %2132  ;;  %2134 = vtanh.f32 %v872_v34  ;;  %v2020_v39 = vmul.f32 -1.442695, %v872_v34 }
 0x7ad   :  { %821 = vrot.lane.b32.xlu0 %v2133_v32, %s2249_s16  ;;  %2136 = vpow2.f32 %v2017_v37 }
 0x7ae   :  { %2138 = vpow2.f32 %v2020_v39 }
 0x7af   :  { %v854_v35 = vpop.f32.mrf.mxu3 }
 0x7b2   :  { %v2135_v36 = vpop.eup %2134 }
 0x7b3   :  { %895 = vrot.lane.b32.xlu1 %v2135_v36, %s2249_s16  ;;  %v2137_v41 = vpop.eup %2136 }
 0x7b4   :  { %v802_v43 = vadd.f32 1.0, %v2137_v41  ;;  %v2139_v45 = vpop.eup %2138 }
 0x7b5   :  { %v876_v38 = vadd.f32 1.0, %v2139_v45 }
 0x7b6   :  { %2140 = vrcp.f32 %v802_v43  ;;  %v814_v58 = vand.u32 2147483648, %v802_v43  ;;  %vm808_vm0 = vweird.f32 %v802_v43  ;;  %v812_v59 = vand.u32 2147483647, %v802_v43 }
 0x7b7   :  { %2142 = vrcp.f32 %v876_v38  ;;  %v888_v2 = vand.u32 2147483648, %v876_v38  ;;  %vm882_vm5 = vweird.f32 %v876_v38  ;;  %v886_v5 = vand.u32 2147483647, %v876_v38 }
 0x7b8   :  { %v815_v62 = vor.u32 1.1754944e-38, %v814_v58  ;;  %vm813_vm3 = vcmp.eq.f32.partialorder %v812_v59, 8.507059e+37 }
 0x7b9   :  { %v889_v13 = vor.u32 1.1754944e-38, %v888_v2  ;;  %vm887_vm7 = vcmp.eq.f32.partialorder %v886_v5, 8.507059e+37 }
 0x7bc   :  { %v2141_v47 = vpop.eup %2140 }
 0x7bd   :  { %v804_v48 = vmul.f32 %v2141_v47, %v802_v43  ;;  %v2143_v49 = vpop.eup %2142  ;;  %vm809_vm15 = vweird.f32 %v2141_v47 }
 0x7be   :  { %v878_v53 = vmul.f32 %v2143_v49, %v876_v38  ;;  %vm810_vm1 = vmor %vm808_vm0, %vm809_vm15  ;;  %vm883_vm4 = vweird.f32 %v2143_v49 }
 0x7bf   :  { %v805_v50 = vsub.f32 1.0, %v804_v48  ;;  %vm884_vm6 = vmor %vm882_vm5, %vm883_vm4 }
 0x7c0   :  { %v879_v56 = vsub.f32 1.0, %v878_v53 }
 0x7c1   :  { %v806_v55 = vmul.f32 %v2141_v47, %v805_v50 }
 0x7c2   :  { %v880_v60 = vmul.f32 %v2143_v49, %v879_v56 }
 0x7c3   :  { %v807_v57 = vadd.f32 %v2141_v47, %v806_v55 }
 0x7c4   :  { %v881_v63 = vadd.f32 %v2143_v49, %v880_v60 }
 0x7c5   :  { %v811_v61 = vsel %vm810_vm1, %v2141_v47, %v807_v57 }
 0x7c6   :  { %v816_v1 = vsel %vm813_vm3, %v815_v62, %v811_v61  ;;  %v885_v12 = vsel %vm884_vm6, %v2143_v49, %v881_v63 }
 0x7c7   :  { %v890_v16 = vsel %vm887_vm7, %v889_v13, %v885_v12  ;;  %v819_v19 = vmul.f32 %v816_v1, %v2520_v7 }
 0x7c8   :  { %v893_v22 = vmul.f32 %v890_v16, %v2524_v15 }
 0x81f   :  { %v822_v0 = vpop.permute.xlu0 %821 }
 0x820   :  { %v824_v4 = vmul.f32 %v822_v0, %v816_v1 }
 0x822   :  { %826 = vrot.lane.b32.xlu2 %v824_v4, %s2250_s17 }
 0x825   :  { %v896_v14 = vpop.permute.xlu1 %895 }
 0x826   :  { %v898_v3 = vmul.f32 %v896_v14, %v890_v16 }
 0x828   :  { %900 = vrot.lane.b32.xlu0 %v898_v3, %s2250_s17 }
 0x87c   :  { %v827_v6 = vpop.permute.xlu2 %826 }
 0x87d   :  { %v2552_v20 = vadd.f32 %v827_v6, %v819_v19 }
 0x87f   :  { %2144 = vtanh.f32 %v2552_v20 }
 0x885   :  { %v2145_v21 = vpop.eup %2144 }
 0x886   :  { %832 = vrot.lane.b32.xlu1 %v2145_v21, %s2249_s16 }
 0x89a   :  { %v901_v23 = vpop.permute.xlu0 %900 }
 0x89b   :  { %v2557_v24 = vadd.f32 %v901_v23, %v893_v22 }
 0x89d   :  { %2146 = vtanh.f32 %v2557_v24 }
 0x8a3   :  { %v2147_v25 = vpop.eup %2146 }
 0x8a4   :  { %906 = vrot.lane.b32.xlu2 %v2147_v25, %s2249_s16 }
 0x8f8   :  { %v833_v26 = vpop.permute.xlu1 %832 }
 0x8f9   :  { %v2561_v7 = vmul.f32 %v833_v26, %v816_v1 }
 0x8fb   :  { %v911_v27 = vpack.c.bf16 %v2561_v7, %v2561_v7 }
 0x8fd   :  { %913 = vrot.lane.b32.xlu0 %v911_v27, %s2250_s17 }
 0x8fe   :  { %v907_v28 = vpop.permute.xlu2 %906 }
 0x8ff   :  { %v909_v29 = vmul.f32 %v907_v28, %v890_v16 }
 0x901   :  { %v910_v31 = vpack.c.bf16 %v909_v29, %v909_v29 }
 0x903   :  { %932 = vrot.lane.b32.xlu1 %v910_v31, %s2250_s17 }
 0x96f   :  { %v914_v15 = vpop.permute.xlu0 %913 }
 0x970   :  { %2021 = vmatmul.msk.bf16.vlgmr.msra.gmra.mxu2 %vm173_vm2, %v914_v15 }
 0x971   :  { %1228 = vmatpush.bf16.msra.mxu2 %v2469_v8 }
 0x975   :  { %v933_v33 = vpop.permute.xlu1 %932  ;;  %1229 = vmatpush.bf16.msra.mxu2 %v2480_v10 }
 0x976   :  { %2022 = vmatmul.msk.bf16.vlgmr.msra.gmra.mxu1 %vm173_vm2, %v933_v33  ;;  %2024 = vmatmul.msk.bf16.vlgmr.msra.gmra.mxu3 %vm173_vm2, %v933_v33 }
 0x977   :  { %1305 = vmatpush.bf16.msra.mxu3 %v2407_v52  ;;  %1247 = vmatpush.bf16.msra.mxu1 %v2474_v9 }
 0x97b   :  { %1306 = vmatpush.bf16.msra.mxu3 %v2416_v54  ;;  %1248 = vmatpush.bf16.msra.mxu1 %v2486_v11 }
 0x9f3   :  { %v927_v34 = vpop.f32.mrf.mxu2  ;;  %v946_v32 = vpop.f32.mrf.mxu1 }
 0x9f4   :  { %v947_v35 = vadd.f32 %v946_v32, %v927_v34 }
 0x9f6   :  { %v950_v36 = vadd.f32 %v2511_v17, %v947_v35 }
 0x9f8   :  { %2148 = vtanh.f32 %v950_v36  ;;  %v2023_v49 = vmul.f32 -1.442695, %v950_v36 }
 0x9f9   :  { %v1004_v37 = vpop.f32.mrf.mxu3 }
 0x9fa   :  { %v1021_v39 = vadd.f32 %v2451_v40, %v1004_v37 }
 0x9fb   :  { %v929_v41 = vpop.f32.mrf.mxu2  ;;  %v948_v43 = vpop.f32.mrf.mxu1 }
 0x9fc   :  { %v1024_v45 = vadd.f32 %v2443_v30, %v1021_v39 }
 0x9fe   :  { %v2149_v38 = vpop.eup %2148  ;;  %2150 = vtanh.f32 %v1024_v45  ;;  %v2026_v40 = vmul.f32 -1.442695, %v1024_v45 }
 0x9ff   :  { %973 = vrot.lane.b32.xlu2 %v2149_v38, %s2249_s16  ;;  %2152 = vpow2.f32 %v2023_v49 }
 0xa01   :  { %v1006_v47 = vpop.f32.mrf.mxu3 }
 0xa04   :  { %v2151_v48 = vpop.eup %2150 }
 0xa05   :  { %1047 = vrot.lane.b32.xlu0 %v2151_v48, %s2249_s16  ;;  %v2153_v50 = vpop.eup %2152 }
 0xa06   :  { %v954_v53 = vadd.f32 1.0, %v2153_v50 }
 0xa08   :  { %2154 = vrcp.f32 %v954_v53  ;;  %v966_v60 = vand.u32 2147483648, %v954_v53  ;;  %vm960_vm9 = vweird.f32 %v954_v53  ;;  %v964_v62 = vand.u32 2147483647, %v954_v53 }
 0xa09   :  { %2156 = vpow2.f32 %v2026_v40 }
 0xa0a   :  { %v967_v1 = vor.u32 1.1754944e-38, %v966_v60  ;;  %vm965_vm11 = vcmp.eq.f32.partialorder %v964_v62, 8.507059e+37 }
 0xa0e   :  { %v2155_v55 = vpop.eup %2154 }
 0xa0f   :  { %v956_v56 = vmul.f32 %v2155_v55, %v954_v53  ;;  %vm961_vm8 = vweird.f32 %v2155_v55  ;;  %v2157_v61 = vpop.eup %2156 }
 0xa10   :  { %vm962_vm10 = vmor %vm960_vm9, %vm961_vm8  ;;  %v1028_v0 = vadd.f32 1.0, %v2157_v61 }
 0xa11   :  { %v957_v57 = vsub.f32 1.0, %v956_v56 }
 0xa12   :  { %2158 = vrcp.f32 %v1028_v0  ;;  %v1040_v19 = vand.u32 2147483648, %v1028_v0  ;;  %vm1034_vm13 = vweird.f32 %v1028_v0  ;;  %v1038_v6 = vand.u32 2147483647, %v1028_v0 }
 0xa13   :  { %v958_v58 = vmul.f32 %v2155_v55, %v957_v57 }
 0xa14   :  { %v1041_v22 = vor.u32 1.1754944e-38, %v1040_v19  ;;  %vm1039_vm15 = vcmp.eq.f32.partialorder %v1038_v6, 8.507059e+37 }
 0xa15   :  { %v959_v59 = vadd.f32 %v2155_v55, %v958_v58 }
 0xa17   :  { %v963_v63 = vsel %vm962_vm10, %v2155_v55, %v959_v59 }
 0xa18   :  { %v968_v4 = vsel %vm965_vm11, %v967_v1, %v963_v63  ;;  %v2159_v12 = vpop.eup %2158 }
 0xa19   :  { %v1030_v13 = vmul.f32 %v2159_v12, %v1028_v0  ;;  %vm1035_vm12 = vweird.f32 %v2159_v12  ;;  %v971_v27 = vmul.f32 %v968_v4, %v2552_v20 }
 0xa1a   :  { %vm1036_vm14 = vmor %vm1034_vm13, %vm1035_vm12 }
 0xa1b   :  { %v1031_v14 = vsub.f32 1.0, %v1030_v13 }
 0xa1d   :  { %v1032_v16 = vmul.f32 %v2159_v12, %v1031_v14 }
 0xa1f   :  { %v1033_v3 = vadd.f32 %v2159_v12, %v1032_v16 }
 0xa21   :  { %v1037_v21 = vsel %vm1036_vm14, %v2159_v12, %v1033_v3 }
 0xa22   :  { %v1042_v25 = vsel %vm1039_vm15, %v1041_v22, %v1037_v21 }
 0xa23   :  { %v1045_v31 = vmul.f32 %v1042_v25, %v2557_v24 }
 0xa59   :  { %v974_v2 = vpop.permute.xlu2 %973 }
 0xa5a   :  { %v976_v5 = vmul.f32 %v974_v2, %v968_v4 }
 0xa5c   :  { %978 = vrot.lane.b32.xlu1 %v976_v5, %s2250_s17 }
 0xa77   :  { %v1048_v23 = vpop.permute.xlu0 %1047 }
 0xa78   :  { %v1050_v26 = vmul.f32 %v1048_v23, %v1042_v25 }
 0xa7a   :  { %1052 = vrot.lane.b32.xlu2 %v1050_v26, %s2250_s17 }
 0xace   :  { %v979_v28 = vpop.permute.xlu1 %978 }
 0xacf   :  { %v2584_v29 = vadd.f32 %v979_v28, %v971_v27 }
 0xad1   :  { %2160 = vtanh.f32 %v2584_v29 }
 0xad4   :  { %v1053_v15 = vpop.permute.xlu2 %1052 }
 0xad5   :  { %v2588_v33 = vadd.f32 %v1053_v15, %v1045_v31 }
 0xad7   :  { %v2161_v34 = vpop.eup %2160  ;;  %2162 = vtanh.f32 %v2588_v33 }
 0xad8   :  { %984 = vrot.lane.b32.xlu0 %v2161_v34, %s2249_s16 }
 0xadd   :  { %v2163_v32 = vpop.eup %2162 }
 0xade   :  { %1058 = vrot.lane.b32.xlu1 %v2163_v32, %s2249_s16 }
 0xb4a   :  { %v985_v35 = vpop.permute.xlu0 %984 }
 0xb4b   :  { %v2593_v20 = vmul.f32 %v985_v35, %v968_v4 }
 0xb4d   :  { %v1063_v36 = vpack.c.bf16 %v2593_v20, %v2593_v20 }
 0xb4f   :  { %1065 = vrot.lane.b32.xlu2 %v1063_v36, %s2250_s17 }
 0xb50   :  { %v1059_v24 = vpop.permute.xlu1 %1058 }
 0xb51   :  { %v1061_v37 = vmul.f32 %v1059_v24, %v1042_v25 }
 0xb53   :  { %v1062_v39 = vpack.c.bf16 %v1061_v37, %v1061_v37 }
 0xb55   :  { %1084 = vrot.lane.b32.xlu0 %v1062_v39, %s2250_s17 }
 0xba9   :  { %v1066_v41 = vpop.permute.xlu2 %1065 }
 0xbaa   :  { %2027 = vmatmul.msk.bf16.vlgmr.msrb.gmra.mxu2 %vm173_vm2, %v1066_v41 }
 0xbab   :  { %1380 = vmatpush.bf16.msrb.mxu2 %v2469_v8 }
 0xbaf   :  { %1381 = vmatpush.bf16.msrb.mxu2 %v2480_v10 }
 0xbc7   :  { %v1085_v43 = vpop.permute.xlu0 %1084 }
 0xbc8   :  { %2028 = vmatmul.msk.bf16.vlgmr.msrb.gmra.mxu1 %vm173_vm2, %v1085_v43  ;;  %2030 = vmatmul.msk.bf16.vlgmr.msrb.gmra.mxu3 %vm173_vm2, %v1085_v43 }
 0xbc9   :  { %1457 = vmatpush.bf16.msrb.mxu3 %v2407_v52  ;;  %1399 = vmatpush.bf16.msrb.mxu1 %v2474_v9 }
 0xbcd   :  { %1458 = vmatpush.bf16.msrb.mxu3 %v2416_v54  ;;  %1400 = vmatpush.bf16.msrb.mxu1 %v2486_v11 }
 0xc2d   :  { %v1079_v45 = vpop.f32.mrf.mxu2 }
 0xc35   :  { %v1081_v38 = vpop.f32.mrf.mxu2 }
 0xc45   :  { %v1098_v47 = vpop.f32.mrf.mxu1 }
 0xc46   :  { %v1099_v48 = vadd.f32 %v1098_v47, %v1079_v45 }
 0xc48   :  { %v1102_v49 = vadd.f32 %v2511_v17, %v1099_v48 }
 0xc4a   :  { %2164 = vtanh.f32 %v1102_v49  ;;  %v2029_v60 = vmul.f32 -1.442695, %v1102_v49 }
 0xc4b   :  { %v1156_v50 = vpop.f32.mrf.mxu3 }
 0xc4c   :  { %v1173_v53 = vadd.f32 %v2453_v42, %v1156_v50  ;;  %v2244_v50 = vld [vmem:[%s2773_s7 + $0x8] sm:$0xff] }
 0xc4d   :  { %v1100_v55 = vpop.f32.mrf.mxu1 }
 0xc4e   :  { %v1176_v56 = vadd.f32 %v2443_v30, %v1173_v53  ;;  %v2245_v53 = vld [vmem:[%s2773_s7] sm:$0xff] }
 0xc50   :  { %v2165_v52 = vpop.eup %2164  ;;  %2166 = vtanh.f32 %v1176_v56  ;;  %v2032_v57 = vmul.f32 -1.442695, %v1176_v56 }
 0xc51   :  { %1125 = vrot.lane.b32.xlu1 %v2165_v52, %s2249_s16 }
 0xc52   :  { %2168 = vpow2.f32 %v2032_v57 }
 0xc53   :  { %v1158_v54 = vpop.f32.mrf.mxu3 }
 0xc56   :  { %v2167_v40 = vpop.eup %2166 }
 0xc57   :  { %1199 = vrot.lane.b32.xlu2 %v2167_v40, %s2249_s16 }
 0xc58   :  { %v2169_v58 = vpop.eup %2168 }
 0xc59   :  { %v1180_v59 = vadd.f32 1.0, %v2169_v58 }
 0xc5b   :  { %2170 = vrcp.f32 %v1180_v59  ;;  %v1192_v4 = vand.u32 2147483648, %v1180_v59  ;;  %vm1186_vm1 = vweird.f32 %v1180_v59  ;;  %v1190_v5 = vand.u32 2147483647, %v1180_v59 }
 0xc5c   :  { %2172 = vpow2.f32 %v2029_v60 }
 0xc5d   :  { %v1193_v14 = vor.u32 1.1754944e-38, %v1192_v4  ;;  %vm1191_vm4 = vcmp.eq.f32.partialorder %v1190_v5, 8.507059e+37 }
 0xc61   :  { %v2171_v61 = vpop.eup %2170 }
 0xc62   :  { %v1182_v42 = vmul.f32 %v2171_v61, %v1180_v59  ;;  %v2173_v62 = vpop.eup %2172  ;;  %vm1187_vm0 = vweird.f32 %v2171_v61 }
 0xc63   :  { %v1106_v0 = vadd.f32 1.0, %v2173_v62  ;;  %vm1188_vm3 = vmor %vm1186_vm1, %vm1187_vm0 }
 0xc64   :  { %v1183_v63 = vsub.f32 1.0, %v1182_v42 }
 0xc65   :  { %2174 = vrcp.f32 %v1106_v0  ;;  %v1118_v25 = vand.u32 2147483648, %v1106_v0  ;;  %vm1112_vm6 = vweird.f32 %v1106_v0  ;;  %v1116_v26 = vand.u32 2147483647, %v1106_v0 }
 0xc66   :  { %v1184_v1 = vmul.f32 %v2171_v61, %v1183_v63 }
 0xc67   :  { %v1119_v28 = vor.u32 1.1754944e-38, %v1118_v25  ;;  %vm1117_vm8 = vcmp.eq.f32.partialorder %v1116_v26, 8.507059e+37 }
 0xc68   :  { %v1185_v2 = vadd.f32 %v2171_v61, %v1184_v1 }
 0xc6a   :  { %v1189_v13 = vsel %vm1188_vm3, %v2171_v61, %v1185_v2 }
 0xc6b   :  { %v2175_v12 = vpop.eup %2174  ;;  %v1194_v19 = vsel %vm1191_vm4, %v1193_v14, %v1189_v13 }
 0xc6c   :  { %v1108_v16 = vmul.f32 %v2175_v12, %v1106_v0  ;;  %vm1113_vm5 = vweird.f32 %v2175_v12  ;;  %v1197_v32 = vmul.f32 %v1194_v19, %v2588_v33 }
 0xc6d   :  { %vm1114_vm7 = vmor %vm1112_vm6, %vm1113_vm5 }
 0xc6e   :  { %v1109_v21 = vsub.f32 1.0, %v1108_v16 }
 0xc70   :  { %v1110_v22 = vmul.f32 %v2175_v12, %v1109_v21 }
 0xc72   :  { %v1111_v23 = vadd.f32 %v2175_v12, %v1110_v22 }
 0xc74   :  { %v1115_v27 = vsel %vm1114_vm7, %v2175_v12, %v1111_v23 }
 0xc75   :  { %v1120_v15 = vsel %vm1117_vm8, %v1119_v28, %v1115_v27 }
 0xc76   :  { %v1123_v37 = vmul.f32 %v1120_v15, %v2584_v29 }
 0xcb1   :  { %v1200_v3 = vpop.permute.xlu2 %1199 }
 0xcb2   :  { %v1202_v6 = vmul.f32 %v1200_v3, %v1194_v19 }
 0xcb4   :  { %1204 = vrot.lane.b32.xlu1 %v1202_v6, %s2250_s17 }
 0xcc3   :  { %v1126_v31 = vpop.permute.xlu1 %1125 }
 0xcc4   :  { %v1128_v34 = vmul.f32 %v1126_v31, %v1120_v15 }
 0xcc6   :  { %1130 = vrot.lane.b32.xlu0 %v1128_v34, %s2250_s17 }
 0xd26   :  { %v1205_v35 = vpop.permute.xlu1 %1204 }
 0xd27   :  { %v2616_v36 = vadd.f32 %v1205_v35, %v1197_v32 }
 0xd29   :  { %2176 = vtanh.f32 %v2616_v36 }
 0xd2f   :  { %v2177_v24 = vpop.eup %2176 }
 0xd30   :  { %1210 = vrot.lane.b32.xlu0 %v2177_v24, %s2249_s16 }
 0xd38   :  { %v1131_v39 = vpop.permute.xlu0 %1130 }
 0xd39   :  { %v2621_v41 = vadd.f32 %v1131_v39, %v1123_v37 }
 0xd3b   :  { %2178 = vtanh.f32 %v2621_v41 }
 0xd41   :  { %v2179_v43 = vpop.eup %2178 }
 0xd42   :  { %1136 = vrot.lane.b32.xlu2 %v2179_v43, %s2249_s16 }
 0xd9c   :  { %v1137_v45 = vpop.permute.xlu2 %1136 }
 0xd9d   :  { %v2625_v33 = vmul.f32 %v1137_v45, %v1120_v15 }
 0xd9f   :  { %v1215_v38 = vpack.c.bf16 %v2625_v33, %v2625_v33 }
 0xda1   :  { %1217 = vrot.lane.b32.xlu1 %v1215_v38, %s2250_s17 }
 0xda2   :  { %v1211_v47 = vpop.permute.xlu0 %1210 }
 0xda3   :  { %v1213_v48 = vmul.f32 %v1211_v47, %v1194_v19 }
 0xda5   :  { %v1214_v49 = vpack.c.bf16 %v1213_v48, %v1213_v48 }
 0xda7   :  { %1236 = vrot.lane.b32.xlu2 %v1214_v49, %s2250_s17 }
 0xe01   :  { %v1237_v29 = vpop.permute.xlu2 %1236 }
 0xe02   :  { %2034 = vmatmul.msk.bf16.vlgmr.msra.gmra.mxu1 %vm173_vm2, %v1237_v29  ;;  %2036 = vmatmul.msk.bf16.vlgmr.msra.gmra.mxu3 %vm173_vm2, %v1237_v29 }
 0xe03   :  { %1551 = vmatpush.bf16.msra.mxu1 %v2474_v9  ;;  %1609 = vmatpush.bf16.msra.mxu3 %v2244_v50 }
 0xe07   :  { %1552 = vmatpush.bf16.msra.mxu1 %v2486_v11  ;;  %1610 = vmatpush.bf16.msra.mxu3 %v2245_v53 }
 0xe13   :  { %v1218_v55 = vpop.permute.xlu1 %1217 }
 0xe14   :  { %2033 = vmatmul.msk.bf16.vlgmr.msra.gmra.mxu2 %vm173_vm2, %v1218_v55 }
 0xe15   :  { %1532 = vmatpush.bf16.msra.mxu2 %v2469_v8 }
 0xe19   :  { %1533 = vmatpush.bf16.msra.mxu2 %v2480_v10 }
 0xe7f   :  { %v1250_v56 = vpop.f32.mrf.mxu1 }
 0xe85   :  { %v1308_v52 = vpop.f32.mrf.mxu3 }
 0xe86   :  { %v1325_v54 = vadd.f32 %v2455_v44, %v1308_v52 }
 0xe87   :  { %v1252_v40 = vpop.f32.mrf.mxu1 }
 0xe88   :  { %v1328_v57 = vadd.f32 %v2443_v30, %v1325_v54 }
 0xe8a   :  { %2180 = vtanh.f32 %v1328_v57  ;;  %v2038_v0 = vmul.f32 -1.442695, %v1328_v57 }
 0xe8d   :  { %v1310_v58 = vpop.f32.mrf.mxu3 }
 0xe90   :  { %v2181_v59 = vpop.eup %2180 }
 0xe91   :  { %1351 = vrot.lane.b32.xlu1 %v2181_v59, %s2249_s16 }
 0xe97   :  { %v1231_v60 = vpop.f32.mrf.mxu2 }
 0xe98   :  { %v1251_v61 = vadd.f32 %v1250_v56, %v1231_v60 }
 0xe9a   :  { %v1254_v42 = vadd.f32 %v2511_v17, %v1251_v61 }
 0xe9c   :  { %2182 = vtanh.f32 %v1254_v42  ;;  %v2035_v30 = vmul.f32 -1.442695, %v1254_v42  ;;  %v2678_v42 = vld [vmem:[%s2775_s8] ss:$0 sm:$0xff] }
 0xe9d   :  { %2184 = vpow2.f32 %v2038_v0 }
 0xe9f   :  { %v1233_v62 = vpop.f32.mrf.mxu2 }
 0xea2   :  { %v2183_v63 = vpop.eup %2182 }
 0xea3   :  { %1277 = vrot.lane.b32.xlu0 %v2183_v63, %s2249_s16  ;;  %v2185_v44 = vpop.eup %2184 }
 0xea4   :  { %v1332_v1 = vadd.f32 1.0, %v2185_v44 }
 0xea6   :  { %2186 = vrcp.f32 %v1332_v1  ;;  %v1344_v3 = vand.u32 2147483648, %v1332_v1  ;;  %vm1338_vm10 = vweird.f32 %v1332_v1  ;;  %v1342_v19 = vand.u32 2147483647, %v1332_v1 }
 0xea7   :  { %2188 = vpow2.f32 %v2035_v30 }
 0xea8   :  { %v1345_v22 = vor.u32 1.1754944e-38, %v1344_v3  ;;  %vm1343_vm12 = vcmp.eq.f32.partialorder %v1342_v19, 8.507059e+37 }
 0xeac   :  { %v2187_v2 = vpop.eup %2186 }
 0xead   :  { %v1334_v4 = vmul.f32 %v2187_v2, %v1332_v1  ;;  %v2189_v5 = vpop.eup %2188  ;;  %vm1339_vm9 = vweird.f32 %v2187_v2 }
 0xeae   :  { %v1258_v13 = vadd.f32 1.0, %v2189_v5  ;;  %vm1340_vm11 = vmor %vm1338_vm10, %vm1339_vm9 }
 0xeaf   :  { %v1335_v12 = vsub.f32 1.0, %v1334_v4 }
 0xeb0   :  { %2190 = vrcp.f32 %v1258_v13  ;;  %v1270_v34 = vand.u32 2147483648, %v1258_v13  ;;  %vm1264_vm14 = vweird.f32 %v1258_v13  ;;  %v1268_v32 = vand.u32 2147483647, %v1258_v13 }
 0xeb1   :  { %v1336_v14 = vmul.f32 %v2187_v2, %v1335_v12 }
 0xeb2   :  { %v1271_v24 = vor.u32 1.1754944e-38, %v1270_v34  ;;  %vm1269_vm0 = vcmp.eq.f32.partialorder %v1268_v32, 8.507059e+37 }
 0xeb3   :  { %v1337_v16 = vadd.f32 %v2187_v2, %v1336_v14 }
 0xeb5   :  { %v1341_v21 = vsel %vm1340_vm11, %v2187_v2, %v1337_v16 }
 0xeb6   :  { %v2191_v6 = vpop.eup %2190  ;;  %v1346_v26 = vsel %vm1343_vm12, %v1345_v22, %v1341_v21 }
 0xeb7   :  { %v1260_v23 = vmul.f32 %v2191_v6, %v1258_v13  ;;  %vm1265_vm13 = vweird.f32 %v2191_v6  ;;  %v1349_v48 = vmul.f32 %v1346_v26, %v2616_v36 }
 0xeb8   :  { %vm1266_vm15 = vmor %vm1264_vm14, %vm1265_vm13 }
 0xeb9   :  { %v1261_v28 = vsub.f32 1.0, %v1260_v23 }
 0xebb   :  { %v1262_v31 = vmul.f32 %v2191_v6, %v1261_v28 }
 0xebd   :  { %v1263_v15 = vadd.f32 %v2191_v6, %v1262_v31 }
 0xebf   :  { %v1267_v35 = vsel %vm1266_vm15, %v2191_v6, %v1263_v15 }
 0xec0   :  { %v1272_v39 = vsel %vm1269_vm0, %v1271_v24, %v1267_v35 }
 0xec1   :  { %v1275_v45 = vmul.f32 %v1272_v39, %v2621_v41 }
 0xf03   :  { %v1352_v25 = vpop.permute.xlu1 %1351 }
 0xf04   :  { %v1354_v27 = vmul.f32 %v1352_v25, %v1346_v26 }
 0xf06   :  { %1356 = vrot.lane.b32.xlu0 %v1354_v27, %s2250_s17 }
 0xf15   :  { %v1278_v37 = vpop.permute.xlu0 %1277 }
 0xf16   :  { %v1280_v43 = vmul.f32 %v1278_v37, %v1272_v39 }
 0xf18   :  { %1282 = vrot.lane.b32.xlu2 %v1280_v43, %s2250_s17 }
 0xf72   :  { %v1283_v38 = vpop.permute.xlu2 %1282 }
 0xf73   :  { %v2652_v47 = vadd.f32 %v1283_v38, %v1275_v45 }
 0xf75   :  { %2192 = vtanh.f32 %v2652_v47 }
 0xf78   :  { %v1357_v49 = vpop.permute.xlu0 %1356 }
 0xf79   :  { %v2656_v29 = vadd.f32 %v1357_v49, %v1349_v48 }
 0xf7b   :  { %v2193_v50 = vpop.eup %2192  ;;  %2194 = vtanh.f32 %v2656_v29 }
 0xf7c   :  { %1288 = vrot.lane.b32.xlu1 %v2193_v50, %s2249_s16 }
 0xf81   :  { %v2195_v53 = vpop.eup %2194 }
 0xf82   :  { %1362 = vrot.lane.b32.xlu2 %v2195_v53, %s2249_s16 }
 0xfdc   :  { %v1363_v55 = vpop.permute.xlu2 %1362 }
 0xfdd   :  { %v1365_v41 = vmul.f32 %v1363_v55, %v1346_v26 }
 0xfdf   :  { %v1366_v56 = vpack.c.bf16 %v1365_v41, %v1365_v41 }
 0xfe1   :  { %1388 = vrot.lane.b32.xlu1 %v1366_v56, %s2250_s17 }
 0xfee   :  { %v1289_v52 = vpop.permute.xlu1 %1288 }
 0xfef   :  { %v2662_v54 = vmul.f32 %v1289_v52, %v1272_v39 }
 0xff1   :  { %v1367_v36 = vpack.c.bf16 %v2662_v54, %v2662_v54 }
 0xff3   :  { %1369 = vrot.lane.b32.xlu0 %v1367_v36, %s2250_s17 }
0x1053   :  { %v1389_v40 = vpop.permute.xlu1 %1388 }
0x1054   :  { %2040 = vmatmul.msk.bf16.vlgmr.msrb.gmra.mxu1 %vm173_vm2, %v1389_v40  ;;  %2042 = vmatmul.msk.bf16.vlgmr.msrb.gmra.mxu3 %vm173_vm2, %v1389_v40 }
0x1055   :  { %1703 = vmatpush.bf16.msrb.mxu1 %v2474_v9 }
0x1059   :  { %1704 = vmatpush.bf16.msrb.mxu1 %v2486_v11 }
0x1065   :  { %v1370_v57 = vpop.permute.xlu0 %1369 }
0x1066   :  { %2039 = vmatmul.msk.bf16.vlgmr.msrb.gmra.mxu2 %vm173_vm2, %v1370_v57 }
0x1067   :  { %1684 = vmatpush.bf16.msrb.mxu2 %v2469_v8 }
0x106b   :  { %1685 = vmatpush.bf16.msrb.mxu2 %v2480_v10 }
0x10d1   :  { %v1402_v58 = vpop.f32.mrf.mxu1 }
0x10d7   :  { %v1460_v59 = vpop.f32.mrf.mxu3 }
0x10d8   :  { %v1477_v60 = vadd.f32 %v2457_v46, %v1460_v59 }
0x10d9   :  { %v1404_v61 = vpop.f32.mrf.mxu1 }
0x10da   :  { %v1480_v9 = vadd.f32 %v2678_v42, %v1477_v60 }
0x10dc   :  { %2196 = vtanh.f32 %v1480_v9  ;;  %v2044_v1 = vmul.f32 -1.442695, %v1480_v9  ;;  %v2708_v9 = vld [vmem:[%s2775_s8 + $0x1] ss:$0 sm:$0xff] }
0x10df   :  { %v1462_v11 = vpop.f32.mrf.mxu3 }
0x10e2   :  { %v2197_v62 = vpop.eup %2196 }
0x10e3   :  { %1503 = vrot.lane.b32.xlu0 %v2197_v62, %s2249_s16 }
0x10e9   :  { %v1383_v8 = vpop.f32.mrf.mxu2 }
0x10ea   :  { %v1403_v63 = vadd.f32 %v1402_v58, %v1383_v8 }
0x10ec   :  { %v1406_v10 = vadd.f32 %v2511_v17, %v1403_v63 }
0x10ee   :  { %2198 = vtanh.f32 %v1406_v10  ;;  %v2041_v44 = vmul.f32 -1.442695, %v1406_v10 }
0x10f0   :  { %2200 = vpow2.f32 %v2041_v44 }
0x10f1   :  { %v1385_v0 = vpop.f32.mrf.mxu2  ;;  %2202 = vpow2.f32 %v2044_v1 }
0x10f4   :  { %v2199_v46 = vpop.eup %2198 }
0x10f5   :  { %1429 = vrot.lane.b32.xlu2 %v2199_v46, %s2249_s16 }
0x10f6   :  { %v2201_v30 = vpop.eup %2200 }
0x10f7   :  { %v1410_v2 = vadd.f32 1.0, %v2201_v30  ;;  %v2203_v4 = vpop.eup %2202 }
0x10f8   :  { %v1484_v5 = vadd.f32 1.0, %v2203_v4 }
0x10f9   :  { %2204 = vrcp.f32 %v1410_v2  ;;  %v1422_v21 = vand.u32 2147483648, %v1410_v2  ;;  %vm1416_vm3 = vweird.f32 %v1410_v2  ;;  %v1420_v22 = vand.u32 2147483647, %v1410_v2 }
0x10fa   :  { %2206 = vrcp.f32 %v1484_v5  ;;  %v1496_v15 = vand.u32 2147483648, %v1484_v5  ;;  %vm1490_vm7 = vweird.f32 %v1484_v5  ;;  %v1494_v32 = vand.u32 2147483647, %v1484_v5 }
0x10fb   :  { %v1423_v26 = vor.u32 1.1754944e-38, %v1422_v21  ;;  %vm1421_vm5 = vcmp.eq.f32.partialorder %v1420_v22, 8.507059e+37 }
0x10fc   :  { %v1497_v24 = vor.u32 1.1754944e-38, %v1496_v15  ;;  %vm1495_vm9 = vcmp.eq.f32.partialorder %v1494_v32, 8.507059e+37 }
0x10ff   :  { %v2205_v12 = vpop.eup %2204 }
0x1100   :  { %v1412_v13 = vmul.f32 %v2205_v12, %v1410_v2  ;;  %v2207_v14 = vpop.eup %2206  ;;  %vm1417_vm1 = vweird.f32 %v2205_v12 }
0x1101   :  { %v1486_v17 = vmul.f32 %v2207_v14, %v1484_v5  ;;  %vm1418_vm4 = vmor %vm1416_vm3, %vm1417_vm1  ;;  %vm1491_vm6 = vweird.f32 %v2207_v14 }
0x1102   :  { %v1413_v16 = vsub.f32 1.0, %v1412_v13  ;;  %vm1492_vm8 = vmor %vm1490_vm7, %vm1491_vm6  ;;  %vm687_vm7 = vcmask 254976  }
0x1103   :  { %v1487_v19 = vsub.f32 1.0, %v1486_v17 }
0x1104   :  { %v1414_v3 = vmul.f32 %v2205_v12, %v1413_v16 }
0x1105   :  { %v1488_v23 = vmul.f32 %v2207_v14, %v1487_v19 }
0x1106   :  { %v1415_v6 = vadd.f32 %v2205_v12, %v1414_v3 }
0x1107   :  { %v1489_v27 = vadd.f32 %v2207_v14, %v1488_v23 }
0x1108   :  { %v1419_v25 = vsel %vm1418_vm4, %v2205_v12, %v1415_v6 }
0x1109   :  { %v1424_v31 = vsel %vm1421_vm5, %v1423_v26, %v1419_v25  ;;  %v1493_v35 = vsel %vm1492_vm8, %v2207_v14, %v1489_v27 }
0x110a   :  { %v1498_v39 = vsel %vm1495_vm9, %v1497_v24, %v1493_v35  ;;  %v1427_v50 = vmul.f32 %v1424_v31, %v2652_v47 }
0x110b   :  { %v1501_v45 = vmul.f32 %v1498_v39, %v2656_v29 }
0x114f   :  { %v1430_v28 = vpop.permute.xlu2 %1429 }
0x1150   :  { %v1432_v34 = vmul.f32 %v1430_v28, %v1424_v31 }
0x1152   :  { %1434 = vrot.lane.b32.xlu1 %v1432_v34, %s2250_s17 }
0x1155   :  { %v1504_v37 = vpop.permute.xlu0 %1503 }
0x1156   :  { %v1506_v43 = vmul.f32 %v1504_v37, %v1498_v39 }
0x1158   :  { %1508 = vrot.lane.b32.xlu2 %v1506_v43, %s2250_s17 }
0x11b2   :  { %v1509_v38 = vpop.permute.xlu2 %1508 }
0x11b3   :  { %v2687_v48 = vadd.f32 %v1509_v38, %v1501_v45 }
0x11b5   :  { %2208 = vtanh.f32 %v2687_v48 }
0x11bb   :  { %v2209_v49 = vpop.eup %2208 }
0x11bc   :  { %1514 = vrot.lane.b32.xlu1 %v2209_v49, %s2249_s16 }
0x11c4   :  { %v1435_v53 = vpop.permute.xlu1 %1434 }
0x11c5   :  { %v2692_v55 = vadd.f32 %v1435_v53, %v1427_v50 }
0x11c7   :  { %2210 = vtanh.f32 %v2692_v55 }
0x11cd   :  { %v2211_v41 = vpop.eup %2210 }
0x11ce   :  { %1440 = vrot.lane.b32.xlu0 %v2211_v41, %s2249_s16 }
0x122e   :  { %v1515_v56 = vpop.permute.xlu1 %1514 }
0x122f   :  { %v1517_v29 = vmul.f32 %v1515_v56, %v1498_v39 }
0x1231   :  { %v1518_v52 = vpack.c.bf16 %v1517_v29, %v1517_v29 }
0x1233   :  { %1540 = vrot.lane.b32.xlu0 %v1518_v52, %s2250_s17 }
0x1240   :  { %v1441_v36 = vpop.permute.xlu0 %1440 }
0x1241   :  { %v2697_v40 = vmul.f32 %v1441_v36, %v1424_v31 }
0x1243   :  { %v1519_v57 = vpack.c.bf16 %v2697_v40, %v2697_v40 }
0x1245   :  { %1521 = vrot.lane.b32.xlu2 %v1519_v57, %s2250_s17 }
0x129f   :  { %v1522_v47 = vpop.permute.xlu2 %1521 }
0x12a0   :  { %2045 = vmatmul.msk.bf16.vlgmr.msra.gmra.mxu2 %vm173_vm2, %v1522_v47 }
0x12a5   :  { %v1541_v58 = vpop.permute.xlu0 %1540 }
0x12a6   :  { %2046 = vmatmul.msk.bf16.vlgmr.msra.gmra.mxu1 %vm173_vm2, %v1541_v58  ;;  %2048 = vmatmul.msk.bf16.vlgmr.msra.gmra.mxu3 %vm173_vm2, %v1541_v58 }
0x1323   :  { %v1535_v59 = vpop.f32.mrf.mxu2  ;;  %v1554_v60 = vpop.f32.mrf.mxu1 }
0x1324   :  { %v1555_v61 = vadd.f32 %v1554_v60, %v1535_v59 }
0x1326   :  { %v1558_v11 = vadd.f32 %v2708_v9, %v1555_v61 }
0x1328   :  { %2212 = vtanh.f32 %v1558_v11  ;;  %v2047_v5 = vmul.f32 -1.442695, %v1558_v11 }
0x1329   :  { %v1612_v62 = vpop.f32.mrf.mxu3 }
0x132a   :  { %v1629_v8 = vadd.f32 %v2459_v51, %v1612_v62 }
0x132b   :  { %v1537_v63 = vpop.f32.mrf.mxu2  ;;  %v1556_v10 = vpop.f32.mrf.mxu1 }
0x132c   :  { %v1632_v0 = vadd.f32 %v2678_v42, %v1629_v8 }
0x132e   :  { %v2213_v46 = vpop.eup %2212  ;;  %2214 = vtanh.f32 %v1632_v0  ;;  %v2050_v30 = vmul.f32 -1.442695, %v1632_v0 }
0x132f   :  { %1581 = vrot.lane.b32.xlu1 %v2213_v46, %s2249_s16 }
0x1330   :  { %2216 = vpow2.f32 %v2050_v30 }
0x1331   :  { %v1614_v44 = vpop.f32.mrf.mxu3 }
0x1334   :  { %v2215_v1 = vpop.eup %2214 }
0x1335   :  { %1655 = vrot.lane.b32.xlu2 %v2215_v1, %s2249_s16 }
0x1336   :  { %v2217_v2 = vpop.eup %2216 }
0x1337   :  { %v1636_v4 = vadd.f32 1.0, %v2217_v2 }
0x1339   :  { %2218 = vrcp.f32 %v1636_v4  ;;  %v1648_v3 = vand.u32 2147483648, %v1636_v4  ;;  %vm1642_vm11 = vweird.f32 %v1636_v4  ;;  %v1646_v19 = vand.u32 2147483647, %v1636_v4 }
0x133a   :  { %2220 = vpow2.f32 %v2047_v5 }
0x133b   :  { %v1649_v22 = vor.u32 1.1754944e-38, %v1648_v3  ;;  %vm1647_vm13 = vcmp.eq.f32.partialorder %v1646_v19, 8.507059e+37 }
0x133f   :  { %v2219_v51 = vpop.eup %2218 }
0x1340   :  { %v1638_v12 = vmul.f32 %v2219_v51, %v1636_v4  ;;  %v2221_v13 = vpop.eup %2220  ;;  %vm1643_vm10 = vweird.f32 %v2219_v51 }
0x1341   :  { %v1562_v42 = vadd.f32 1.0, %v2221_v13  ;;  %vm1644_vm12 = vmor %vm1642_vm11, %vm1643_vm10 }
0x1342   :  { %v1639_v14 = vsub.f32 1.0, %v1638_v12 }
0x1343   :  { %2222 = vrcp.f32 %v1562_v42  ;;  %v1574_v34 = vand.u32 2147483648, %v1562_v42  ;;  %vm1568_vm15 = vweird.f32 %v1562_v42  ;;  %v1572_v32 = vand.u32 2147483647, %v1562_v42 }
0x1344   :  { %v1640_v16 = vmul.f32 %v2219_v51, %v1639_v14 }
0x1345   :  { %v1575_v24 = vor.u32 1.1754944e-38, %v1574_v34  ;;  %vm1573_vm1 = vcmp.eq.f32.partialorder %v1572_v32, 8.507059e+37  ;;  %v2107_v34 = vld [vmem:[%s2777_s10] ss:$0 sm:$0xff] }
0x1346   :  { %v1641_v17 = vadd.f32 %v2219_v51, %v1640_v16 }
0x1348   :  { %v1645_v21 = vsel %vm1644_vm12, %v2219_v51, %v1641_v17 }
0x1349   :  { %v2223_v6 = vpop.eup %2222  ;;  %v1650_v26 = vsel %vm1647_vm13, %v1649_v22, %v1645_v21 }
0x134a   :  { %v1564_v23 = vmul.f32 %v2223_v6, %v1562_v42  ;;  %vm1569_vm14 = vweird.f32 %v2223_v6  ;;  %v1653_v45 = vmul.f32 %v1650_v26, %v2687_v48 }
0x134b   :  { %vm1570_vm0 = vmor %vm1568_vm15, %vm1569_vm14  ;;  %vm1841_vm15 = vcmask 15360  }
0x134c   :  { %v1565_v28 = vsub.f32 1.0, %v1564_v23 }
0x134e   :  { %v1566_v31 = vmul.f32 %v2223_v6, %v1565_v28 }
0x1350   :  { %v1567_v15 = vadd.f32 %v2223_v6, %v1566_v31 }
0x1352   :  { %v1571_v35 = vsel %vm1570_vm0, %v2223_v6, %v1567_v15 }
0x1353   :  { %v1576_v39 = vsel %vm1573_vm1, %v1575_v24, %v1571_v35 }
0x1354   :  { %v1579_v53 = vmul.f32 %v1576_v39, %v2692_v55 }
0x138f   :  { %v1656_v25 = vpop.permute.xlu2 %1655 }
0x1390   :  { %v1658_v27 = vmul.f32 %v1656_v25, %v1650_v26 }
0x1392   :  { %1660 = vrot.lane.b32.xlu1 %v1658_v27, %s2250_s17 }
0x13a1   :  { %v1582_v37 = vpop.permute.xlu1 %1581 }
0x13a2   :  { %v1584_v43 = vmul.f32 %v1582_v37, %v1576_v39 }
0x13a4   :  { %1586 = vrot.lane.b32.xlu0 %v1584_v43, %s2250_s17 }
0x1404   :  { %v1661_v38 = vpop.permute.xlu1 %1660 }
0x1405   :  { %v1663_v49 = vadd.f32 %v1661_v38, %v1653_v45 }
0x1407   :  { %2224 = vtanh.f32 %v1663_v49 }
0x140d   :  { %v2225_v50 = vpop.eup %2224 }
0x140e   :  { %1666 = vrot.lane.b32.xlu0 %v2225_v50, %s2249_s16 }
0x1416   :  { %v1587_v41 = vpop.permute.xlu0 %1586 }
0x1417   :  { %v1589_v56 = vadd.f32 %v1587_v41, %v1579_v53 }
0x1419   :  { %2226 = vtanh.f32 %v1589_v56 }
0x141f   :  { %v2227_v29 = vpop.eup %2226 }
0x1420   :  { %1592 = vrot.lane.b32.xlu2 %v2227_v29, %s2249_s16 }
0x147a   :  { %v1593_v52 = vpop.permute.xlu2 %1592 }
0x147b   :  { %v1595_v36 = vmul.f32 %v1593_v52, %v1576_v39 }
0x147d   :  { %v1671_v57 = vpack.c.bf16 %v1595_v36, %v1595_v36 }
0x147f   :  { %1673 = vrot.lane.b32.xlu1 %v1671_v57, %s2250_s17 }
0x1480   :  { %v1667_v48 = vpop.permute.xlu0 %1666 }
0x1481   :  { %v1669_v47 = vmul.f32 %v1667_v48, %v1650_v26 }
0x1483   :  { %v1670_v58 = vpack.c.bf16 %v1669_v47, %v1669_v47 }
0x1485   :  { %1692 = vrot.lane.b32.xlu2 %v1670_v58, %s2250_s17 }
0x14df   :  { %v1693_v59 = vpop.permute.xlu2 %1692 }
0x14e0   :  { %2052 = vmatmul.msk.bf16.vlgmr.msrb.gmra.mxu1 %vm173_vm2, %v1693_v59 }
0x14f1   :  { %v1674_v55 = vpop.permute.xlu1 %1673 }
0x14f2   :  { %2051 = vmatmul.msk.bf16.vlgmr.msrb.gmra.mxu2 %vm173_vm2, %v1674_v55 }
0x155d   :  { %v1706_v60 = vpop.f32.mrf.mxu1 }
0x1565   :  { %v1708_v61 = vpop.f32.mrf.mxu1 }
0x1575   :  { %v1687_v11 = vpop.f32.mrf.mxu2 }
0x1576   :  { %v1707_v62 = vadd.f32 %v1706_v60, %v1687_v11 }
0x1578   :  { %v1710_v8 = vadd.f32 %v2708_v9, %v1707_v62 }
0x157a   :  { %2228 = vtanh.f32 %v1710_v8  ;;  %v2053_v0 = vmul.f32 -1.442695, %v1710_v8 }
0x157c   :  { %2230 = vpow2.f32 %v2053_v0 }
0x157d   :  { %v1689_v63 = vpop.f32.mrf.mxu2 }
0x1580   :  { %v2229_v10 = vpop.eup %2228 }
0x1581   :  { %1733 = vrot.lane.b32.xlu0 %v2229_v10, %s2249_s16 }
0x1582   :  { %v2231_v46 = vpop.eup %2230 }
0x1583   :  { %v1714_v44 = vadd.f32 1.0, %v2231_v46 }
0x1585   :  { %2232 = vrcp.f32 %v1714_v44  ;;  %v1726_v5 = vand.u32 2147483648, %v1714_v44  ;;  %vm1720_vm4 = vweird.f32 %v1714_v44  ;;  %v1724_v51 = vand.u32 2147483647, %v1714_v44 }
0x1587   :  { %v1727_v12 = vor.u32 1.1754944e-38, %v1726_v5  ;;  %vm1725_vm6 = vcmp.eq.f32.partialorder %v1724_v51, 8.507059e+37 }
0x1589   :  { %684 = vrot.lane.b32.xlu0 %v2529_v18, %s2250_s17 }
0x158b   :  { %v2233_v1 = vpop.eup %2232 }
0x158c   :  { %v1716_v9 = vmul.f32 %v2233_v1, %v1714_v44  ;;  %vm1721_vm3 = vweird.f32 %v2233_v1 }
0x158d   :  { %vm1722_vm5 = vmor %vm1720_vm4, %vm1721_vm3 }
0x158e   :  { %v1717_v30 = vsub.f32 1.0, %v1716_v9 }
0x1590   :  { %v1718_v2 = vmul.f32 %v2233_v1, %v1717_v30 }
0x1591   :  { %1141 = vrot.lane.b32.xlu0 %v2625_v33, %s2250_s17 }
0x1592   :  { %v1719_v4 = vadd.f32 %v2233_v1, %v1718_v2 }
0x1594   :  { %v1723_v18 = vsel %vm1722_vm5, %v2233_v1, %v1719_v4 }
0x1595   :  { %v1728_v13 = vsel %vm1725_vm6, %v1727_v12, %v1723_v18 }
0x1596   :  { %v1731_v3 = vmul.f32 %v1728_v13, %v1589_v56 }
0x1599   :  { %1597 = vrot.lane.b32.xlu0 %v1595_v36, %s2250_s17 }
0x15f3   :  { %v1734_v33 = vpop.permute.xlu0 %1733 }
0x15f4   :  { %v1736_v14 = vmul.f32 %v1734_v33, %v1728_v13 }
0x15f6   :  { %1738 = vrot.lane.b32.xlu1 %v1736_v14, %s2250_s17 }
0x15fb   :  { %v685_v42 = vpop.permute.xlu0 %684 }
0x15fc   :  { %688 = vst.msk [vmem:[#allocation3] sm:$0x3] %vm687_vm7, %v685_v42 }
0x15fe   :  { %837 = vrot.lane.b32.xlu1 %v2561_v7, %s2250_s17 }
0x1603   :  { %v1142_v16 = vpop.permute.xlu0 %1141 }
0x1604   :  { %1144 = vst.msk [vmem:[#allocation3 + $0x6] sm:$0x3] %vm687_vm7, %v1142_v16 }
0x1606   :  { %1293 = vrot.lane.b32.xlu1 %v2662_v54, %s2250_s17  ;;  %v2094_v54 = vld [vmem:[%s2776_s9 + $0x8] sm:$0xff] }
0x1607   :  { %1785 = vmatpush.bf16.msrb.mxu3 %v2094_v54 }
0x160b   :  { %v1598_v17 = vpop.permute.xlu0 %1597 }
0x160c   :  { %1600 = vst.msk [vmem:[#allocation3 + $0xc] sm:$0x3] %vm687_vm7, %v1598_v17 }
0x1668   :  { %v1739_v19 = vpop.permute.xlu1 %1738 }
0x1669   :  { %v1741_v6 = vadd.f32 %v1739_v19, %v1731_v3 }
0x166b   :  { %2234 = vtanh.f32 %v1741_v6 }
0x1670   :  { %v838_v21 = vpop.permute.xlu1 %837 }
0x1671   :  { %v2235_v22 = vpop.eup %2234  ;;  %840 = vst.msk [vmem:[#allocation3 + $0x2] sm:$0x3] %vm687_vm7, %v838_v21 }
0x1672   :  { %1744 = vrot.lane.b32.xlu2 %v2235_v22, %s2249_s16 }
0x1678   :  { %v1294_v7 = vpop.permute.xlu1 %1293 }
0x1679   :  { %1296 = vst.msk [vmem:[#allocation3 + $0x8] sm:$0x3] %vm687_vm7, %v1294_v7 }
0x167a   :  { %989 = vrot.lane.b32.xlu2 %v2593_v20, %s2250_s17  ;;  %v2093_v20 = vld [vmem:[%s2776_s9] sm:$0xff]  ;;  %s2251_s9 = smov 126  }
0x167b   :  { %1786 = vmatpush.bf16.msrb.mxu3 %v2093_v20 }
0x1682   :  { %1445 = vrot.lane.b32.xlu2 %v2697_v40, %s2250_s17 }
0x16cc   :  { %v1745_v23 = vpop.permute.xlu2 %1744 }
0x16cd   :  { %v1747_v25 = vmul.f32 %v1745_v23, %v1728_v13 }
0x16cf   :  { %1749 = vrot.lane.b32.xlu1 %v1747_v25, %s2250_s17 }
0x16d4   :  { %v990_v26 = vpop.permute.xlu2 %989 }
0x16d5   :  { %992 = vst.msk [vmem:[#allocation3 + $0x4] sm:$0x3] %vm687_vm7, %v990_v26 }
0x16dc   :  { %v1446_v27 = vpop.permute.xlu2 %1445  ;;  %v1753_v28 = vld [vmem:[#allocation3] sm:$0xff] }
0x16dd   :  { %1448 = vst.msk [vmem:[#allocation3 + $0xa] sm:$0x3] %vm687_vm7, %v1446_v27 }
0x1741   :  { %v1750_v40 = vpop.permute.xlu1 %1749 }
0x1742   :  { %1752 = vst.msk [vmem:[#allocation3 + $0xe] sm:$0x3] %vm687_vm7, %v1750_v40 }
0x1749   :  { %v1754_v31 = vld [vmem:[#allocation3 + $0x8] sm:$0xff] }
0x174a   :  { %v1755_v15 = vpack.c.bf16 %v1754_v31, %v1753_v28 }
0x174c   :  { %2062 = vmatmul.msk.bf16.vlgmr.msrb.gmra.mxu3 %vm173_vm2, %v1755_v15 }
0x17cf   :  { %v1788_v32 = vpop.f32.mrf.mxu3 }
0x17d0   :  { %v1789_v35 = vadd.f32 %v2107_v34, %v1788_v32 }
0x17d2   :  { %v2063_v24 = vmul.f32 -1.442695, %v1789_v35 }
0x17d4   :  { %2236 = vpow2.f32 %v2063_v24 }
0x17d7   :  { %v1790_v37 = vpop.f32.mrf.mxu3 }
0x17d8   :  { %v1791_v39 = vadd.f32 %v2107_v34, %v1790_v37 }
0x17da   :  { %v2237_v43 = vpop.eup %2236  ;;  %v2064_v45 = vmul.f32 -1.442695, %v1791_v39 }
0x17db   :  { %v1799_v38 = vadd.f32 1.0, %v2237_v43 }
0x17dc   :  { %2238 = vpow2.f32 %v2064_v45 }
0x17dd   :  { %2240 = vrcp.f32 %v1799_v38  ;;  %v1812_v29 = vand.u32 2147483648, %v1799_v38  ;;  %v1810_v36 = vand.u32 2147483647, %v1799_v38  ;;  %vm1806_vm8 = vweird.f32 %v1799_v38 }
0x17df   :  { %v1813_v47 = vor.u32 1.1754944e-38, %v1812_v29  ;;  %vm1811_vm10 = vcmp.eq.f32.partialorder %v1810_v36, 8.507059e+37 }
0x17e2   :  { %v2239_v49 = vpop.eup %2238 }
0x17e3   :  { %v2241_v50 = vpop.eup %2240  ;;  %v1800_v53 = vadd.f32 1.0, %v2239_v49 }
0x17e4   :  { %v1802_v41 = vmul.f32 %v2241_v50, %v1799_v38  ;;  %vm1807_vm2 = vweird.f32 %v2241_v50 }
0x17e5   :  { %2242 = vrcp.f32 %v1800_v53  ;;  %vm1808_vm9 = vmor %vm1806_vm8, %vm1807_vm2  ;;  %v1827_v61 = vand.u32 2147483648, %v1800_v53  ;;  %v1825_v62 = vand.u32 2147483647, %v1800_v53  ;;  %vm1821_vm12 = vweird.f32 %v1800_v53 }
0x17e6   :  { %v1803_v56 = vsub.f32 1.0, %v1802_v41 }
0x17e7   :  { %v1828_v63 = vor.u32 1.1754944e-38, %v1827_v61  ;;  %vm1826_vm14 = vcmp.eq.f32.partialorder %v1825_v62, 8.507059e+37 }
0x17e8   :  { %v1804_v52 = vmul.f32 %v2241_v50, %v1803_v56 }
0x17ea   :  { %v1805_v57 = vadd.f32 %v2241_v50, %v1804_v52 }
0x17eb   :  { %v2243_v48 = vpop.eup %2242 }
0x17ec   :  { %v1809_v58 = vsel %vm1808_vm9, %v2241_v50, %v1805_v57  ;;  %v1817_v59 = vmul.f32 %v2243_v48, %v1800_v53  ;;  %vm1822_vm11 = vweird.f32 %v2243_v48 }
0x17ed   :  { %v1814_v55 = vsel %vm1811_vm10, %v1813_v47, %v1809_v58  ;;  %vm1823_vm13 = vmor %vm1821_vm12, %vm1822_vm11 }
0x17ee   :  { %1833 = vrot.lane.b32.xlu2 %v1814_v55, %s2251_s9  ;;  %v1818_v60 = vsub.f32 1.0, %v1817_v59 }
0x17f0   :  { %v1819_v11 = vmul.f32 %v2243_v48, %v1818_v60 }
0x17f2   :  { %v1820_v8 = vadd.f32 %v2243_v48, %v1819_v11 }
0x17f4   :  { %v1824_v10 = vsel %vm1823_vm13, %v2243_v48, %v1820_v8 }
0x17f5   :  { %v1829_v0 = vsel %vm1826_vm14, %v1828_v63, %v1824_v10 }
0x17f6   :  { %1835 = vrot.lane.b32.xlu0 %v1829_v0, %s2251_s9 }
0x1848   :  { %v1834_v46 = vpop.permute.xlu2 %1833 }
0x1849   :  { %v1839_v44 = vmul.f32 %v1834_v46, %v1789_v35 }
0x184b   :  { %1842 = vst.msk [vmem:[%s2778_s11] sm:$0xff] %vm1841_vm15, %v1839_v44 }
0x1868   :  { %v1836_v1 = vpop.permute.xlu0 %1835 }
0x1869   :  { %v1840_v9 = vmul.f32 %v1836_v1, %v1791_v39 }
0x186b   :  { %1843 = vst.msk [vmem:[%s2778_s11 + $0x8] sm:$0xff] %vm1841_vm15, %v1840_v9 }

</bundles_post_ra>
